<compile_context>
chip_gen: v7x
topology: tpu7x:2x2x1
jax: 0.10.0
libtpu: 0.0.40
codegen_flags: <defaults>
</compile_context>

<pallas_src>
import functools
import math

import jax
import jax.numpy as jnp
from jax import lax
from jax.experimental import pallas as pl
from jax.experimental.pallas import tpu as pltpu


def _round_up(x, m):
    return ((x + m - 1) // m) * m


def _sage_kernel(adj_ref, hk_ref, hs_ref, w1t_ref, w2t_ref, b_ref, g_ref,
                 be_ref, o_ref, acc_ref, *, f_in, f_out, fp_in):
    k = pl.program_id(1)

    @pl.when(k == 0)
    def _():
        acc_ref[...] = jnp.zeros_like(acc_ref)

    # --- accumulate A[i_tile, k_tile] @ [hi | lo | 1 | 0...] on the bf16 MXU ---
    # adjacency is exactly 0/1 in bf16; hi/lo halves are folded at finalize.
    acc_ref[...] += jnp.dot(adj_ref[...], hk_ref[...],
                            preferred_element_type=jnp.float32)

    # --- finalize: linear (split-weight concat), LayerNorm, ReLU -------------
    @pl.when(k == pl.num_programs(1) - 1)
    def _():
        acc = acc_ref[...]                          # [TM, 2*FP_IN]
        ah = acc[:, :fp_in] + acc[:, fp_in:]        # A @ (hi + lo)  ~=  A @ h
        deg = ah[:, f_in:f_in + 1]                  # folded in-degree column
        norm = jnp.where(deg > 0.0, pl.reciprocal(deg, approx=False), 0.0)
        ahn = ah * norm                             # padding rows of W2^T are 0

        # self features reconstructed from the resident [hi | lo] tile.
        h2 = hs_ref[...]
        hs = (h2[:, :fp_in].astype(jnp.float32)
              + h2[:, fp_in:].astype(jnp.float32))  # [TM, FP_IN]

        # concat(h, ah*norm) @ W^T  ==  h @ W1^T + (ah*norm) @ W2^T
        z = (jnp.dot(hs, w1t_ref[...], preferred_element_type=jnp.float32)
             + jnp.dot(ahn, w2t_ref[...], preferred_element_type=jnp.float32)
             + b_ref[...])                          # [TM, FP_OUT]; padding cols = 0

        # LayerNorm over the true f_out features (padding columns are zero).
        inv_f = 1.0 / f_out
        s1 = jnp.sum(z, axis=-1, keepdims=True)
        s2 = jnp.sum(z * z, axis=-1, keepdims=True)
        mu = s1 * inv_f
        var = s2 * inv_f - mu * mu
        zn = (z - mu) * lax.rsqrt(var + 1e-5)
        zn = zn * g_ref[...] + be_ref[...]

        o_ref[...] = jnp.maximum(zn, 0.0).astype(o_ref.dtype)


def graphsage_layer(adj, h, weight, bias, gamma, beta):
    """adj: [N, N] (0/1), h: [N, F_in], weight: [F_out, 2*F_in] (torch Linear)."""
    n, f_in = h.shape
    f_out = weight.shape[0]

    # Lane-dense padded feature dims (+1 lane for the folded degree column).
    fp_in = _round_up(f_in + 1, 128)
    fp_out = _round_up(f_out, 128)

    # Tile sizes: multiples of (8, 128) that divide the padded node count.
    n_pad = _round_up(n, 128)
    tm = math.gcd(n_pad, 256)                       # row tile (128 or 256)
    tk = math.gcd(n_pad, 512)                       # adjacency K tile (128/256/512)
    grid = (n_pad // tm, n_pad // tk)

    # Adjacency in bf16 (exact for 0/1 values), zero-padded to [n_pad, n_pad].
    adj_p = jnp.pad(adj.astype(jnp.bfloat16),
                    ((0, n_pad - n), (0, n_pad - n)))

    # Augmented features [h | 1 | 0...]: the ones column makes the aggregation
    # matmul produce the in-degree for free in column f_in.
    h_aug = jnp.concatenate(
        [h.astype(jnp.float32), jnp.ones((n, 1), jnp.float32)], axis=1)
    h_aug = jnp.pad(h_aug, ((0, n_pad - n), (0, fp_in - (f_in + 1))))

    # Two-term bf16 split: h = hi + lo with combined error ~2^-16 relative, so
    # the aggregation matmul can use the fast bf16 MXU path at f32 accuracy.
    h_hi = h_aug.astype(jnp.bfloat16)
    h_lo = (h_aug - h_hi.astype(jnp.float32)).astype(jnp.bfloat16)
    h2 = jnp.concatenate([h_hi, h_lo], axis=1)      # [n_pad, 2*fp_in] bf16

    # Split + transpose + zero-pad the linear weight (padding rows/cols are 0,
    # so the degree column and all padding contribute nothing to z).
    w1t = jnp.pad(jnp.transpose(weight[:, :f_in]).astype(jnp.float32),
                  ((0, fp_in - f_in), (0, fp_out - f_out)))
    w2t = jnp.pad(jnp.transpose(weight[:, f_in:]).astype(jnp.float32),
                  ((0, fp_in - f_in), (0, fp_out - f_out)))
    b_p = jnp.pad(bias.astype(jnp.float32), (0, fp_out - f_out)).reshape(1, fp_out)
    g_p = jnp.pad(gamma.astype(jnp.float32), (0, fp_out - f_out)).reshape(1, fp_out)
    be_p = jnp.pad(beta.astype(jnp.float32), (0, fp_out - f_out)).reshape(1, fp_out)

    kernel = functools.partial(_sage_kernel, f_in=f_in, f_out=f_out, fp_in=fp_in)

    out = pl.pallas_call(
        kernel,
        out_shape=jax.ShapeDtypeStruct((n_pad, fp_out), jnp.float32),
        grid_spec=pltpu.PrefetchScalarGridSpec(
            num_scalar_prefetch=0,
            grid=grid,
            in_specs=[
                pl.BlockSpec((tm, tk), lambda i, k: (i, k)),            # adj tile
                pl.BlockSpec((tk, 2 * fp_in), lambda i, k: (k, 0)),     # [hi|lo] (agg)
                pl.BlockSpec((tm, 2 * fp_in), lambda i, k: (i, 0)),     # [hi|lo] (self)
                pl.BlockSpec((fp_in, fp_out), lambda i, k: (0, 0)),     # W1^T (resident)
                pl.BlockSpec((fp_in, fp_out), lambda i, k: (0, 0)),     # W2^T (resident)
                pl.BlockSpec((1, fp_out), lambda i, k: (0, 0)),         # bias
                pl.BlockSpec((1, fp_out), lambda i, k: (0, 0)),         # gamma
                pl.BlockSpec((1, fp_out), lambda i, k: (0, 0)),         # beta
            ],
            out_specs=pl.BlockSpec((tm, fp_out), lambda i, k: (i, 0)),
            scratch_shapes=[pltpu.VMEM((tm, 2 * fp_in), jnp.float32)],
        ),
        compiler_params=pltpu.CompilerParams(
            dimension_semantics=("parallel", "arbitrary"),
            vmem_limit_bytes=32 * 1024 * 1024,
        ),
    )(adj_p, h2, h2, w1t, w2t, b_p, g_p, be_p)

    return out[:n, :f_out].astype(h.dtype)


def _reference(adj, h, weight, bias, gamma, beta):
    deg = jnp.sum(adj, axis=1, keepdims=True)
    norm = jnp.where(deg > 0.0, 1.0 / deg, 0.0)
    ah = (adj @ h) * norm
    hc = jnp.concatenate([h, ah], axis=1)
    z = hc @ weight.T + bias
    mu = jnp.mean(z, axis=-1, keepdims=True)
    var = jnp.mean((z - mu) ** 2, axis=-1, keepdims=True)
    zn = (z - mu) / jnp.sqrt(var + 1e-5) * gamma + beta
    return jnp.maximum(zn, 0.0)


if __name__ == "__main__":
    N, F_IN, F_OUT = 300, 32, 32

    key = jax.random.PRNGKey(0)
    k_adj, k_h, k_w, k_b = jax.random.split(key, 4)

    # Random sparse binary adjacency (A[i, j] = 1 iff edge j -> i), avg deg ~5.
    adj = (jax.random.uniform(k_adj, (N, N)) < (5.0 / N)).astype(jnp.float32)

    # Node features.
    h = jax.random.normal(k_h, (N, F_IN), dtype=jnp.float32)

    # nn.Linear(2*F_IN, F_OUT) params, uniform(-stdv, stdv), stdv = 1/sqrt(2*F_IN).
    stdv = 1.0 / math.sqrt(2 * F_IN)
    weight = jax.random.uniform(k_w, (F_OUT, 2 * F_IN),
                                minval=-stdv, maxval=stdv, dtype=jnp.float32)
    bias = jax.random.uniform(k_b, (F_OUT,),
                              minval=-stdv, maxval=stdv, dtype=jnp.float32)

    # LayerNorm affine params (PyTorch default init).
    gamma = jnp.ones((F_OUT,), jnp.float32)
    beta = jnp.zeros((F_OUT,), jnp.float32)

    out = graphsage_layer(adj, h, weight, bias, gamma, beta)
    out = jax.block_until_ready(out)

    ref = _reference(adj, h, weight, bias, gamma, beta)
    assert out.shape == ref.shape, (out.shape, ref.shape)
    assert jnp.allclose(out, ref, atol=1e-3, rtol=1e-3), "mismatch vs reference"

    print("KERNEL_OK")
</pallas_src>

<mosaic_0001>
module attributes {stable_mosaic.version = 11 : i64} {
  func.func @_sage_kernel(%arg0: i32, %arg1: i32, %arg2: memref<128x128xbf16, #tpu.memory_space<vmem>>, %arg3: memref<128x256xbf16, #tpu.memory_space<vmem>>, %arg4: memref<128x256xbf16, #tpu.memory_space<vmem>>, %arg5: memref<128x128xf32, #tpu.memory_space<vmem>>, %arg6: memref<128x128xf32, #tpu.memory_space<vmem>>, %arg7: memref<1x128xf32, #tpu.memory_space<vmem>>, %arg8: memref<1x128xf32, #tpu.memory_space<vmem>>, %arg9: memref<1x128xf32, #tpu.memory_space<vmem>>, %arg10: memref<128x128xf32, #tpu.memory_space<vmem>>, %arg11: memref<128x256xf32, #tpu.memory_space<vmem>>) attributes {dimension_semantics = [#tpu.dimension_semantics<parallel>, #tpu.dimension_semantics<arbitrary>], iteration_bounds = array<i64: 3, 3>, scalar_prefetch = 0 : i64, scratch_operands = 1 : i64, tpu.core_type = #tpu.core_type<tc>, window_params = [{transform_indices = @transform_0, window_bounds = array<i64: 128, 128>}, {transform_indices = @transform_1, window_bounds = array<i64: 128, 256>}, {transform_indices = @transform_2, window_bounds = array<i64: 128, 256>}, {pipeline_mode = #tpu.pipeline_mode<synchronous>, transform_indices = @transform_3, window_bounds = array<i64: 128, 128>}, {pipeline_mode = #tpu.pipeline_mode<synchronous>, transform_indices = @transform_4, window_bounds = array<i64: 128, 128>}, {pipeline_mode = #tpu.pipeline_mode<synchronous>, transform_indices = @transform_5, window_bounds = array<i64: 1, 128>}, {pipeline_mode = #tpu.pipeline_mode<synchronous>, transform_indices = @transform_6, window_bounds = array<i64: 1, 128>}, {pipeline_mode = #tpu.pipeline_mode<synchronous>, transform_indices = @transform_7, window_bounds = array<i64: 1, 128>}, {transform_indices = @transform_8, window_bounds = array<i64: 128, 128>}]} {
    %c0_i32 = arith.constant 0 : i32
    %0 = arith.cmpi eq, %arg1, %c0_i32 : i32
    %1 = arith.extui %0 : i1 to i32
    %c0_i32_0 = arith.constant 0 : i32
    %2 = arith.cmpi ne, %1, %c0_i32_0 : i32
    scf.if %2 {
      %cst_9 = arith.constant 0.000000e+00 : f32
      %12 = vector.broadcast %cst_9 : f32 to vector<128x256xf32>
      %c0_10 = arith.constant 0 : index
      %c0_11 = arith.constant 0 : index
      %13 = vector.load %arg11[%c0_10, %c0_11] : memref<128x256xf32, #tpu.memory_space<vmem>>, vector<128x256xf32>
      tpu.vector_store %arg11[%c0_10, %c0_11], %12 {strides = array<i32>} : memref<128x256xf32, #tpu.memory_space<vmem>>, vector<128x256xf32>,
    } else {
    }
    %c0 = arith.constant 0 : index
    %c0_1 = arith.constant 0 : index
    %3 = vector.load %arg11[%c0, %c0_1] : memref<128x256xf32, #tpu.memory_space<vmem>>, vector<128x256xf32>
    %c0_2 = arith.constant 0 : index
    %c0_3 = arith.constant 0 : index
    %4 = vector.load %arg2[%c0_2, %c0_3] : memref<128x128xbf16, #tpu.memory_space<vmem>>, vector<128x128xbf16>
    %c0_4 = arith.constant 0 : index
    %c0_5 = arith.constant 0 : index
    %5 = vector.load %arg3[%c0_4, %c0_5] : memref<128x256xbf16, #tpu.memory_space<vmem>>, vector<128x256xbf16>
    %cst = arith.constant dense<0.000000e+00> : vector<128x256xf32>
    %6 = tpu.matmul %4, %5, %cst {dimension_numbers = #tpu.dot_dimension_numbers<[1], [0], [0], [1], [0, 0, 1, 1], [], []>} : vector<128x128xbf16>, vector<128x256xbf16>, vector<128x256xf32> -> vector<128x256xf32>
    %7 = arith.addf %3, %6 : vector<128x256xf32>
    %c0_6 = arith.constant 0 : index
    %c0_7 = arith.constant 0 : index
    %8 = vector.load %arg11[%c0_6, %c0_7] : memref<128x256xf32, #tpu.memory_space<vmem>>, vector<128x256xf32>
    tpu.vector_store %arg11[%c0_6, %c0_7], %7 {strides = array<i32>} : memref<128x256xf32, #tpu.memory_space<vmem>>, vector<128x256xf32>,
    %c2_i32 = arith.constant 2 : i32
    %9 = arith.cmpi eq, %arg1, %c2_i32 : i32
    %10 = arith.extui %9 : i1 to i32
    %c0_i32_8 = arith.constant 0 : i32
    %11 = arith.cmpi ne, %10, %c0_i32_8 : i32
    scf.if %11 {
      %c0_9 = arith.constant 0 : index
      %c0_10 = arith.constant 0 : index
      %12 = vector.load %arg11[%c0_9, %c0_10] : memref<128x256xf32, #tpu.memory_space<vmem>>, vector<128x256xf32>
      %13 = vector.extract_strided_slice %12 {offsets = [0, 0], sizes = [128, 128], strides = [1, 1]} : vector<128x256xf32> to vector<128x128xf32>
      %14 = vector.extract_strided_slice %12 {offsets = [0, 128], sizes = [128, 128], strides = [1, 1]} : vector<128x256xf32> to vector<128x128xf32>
      %15 = arith.addf %13, %14 : vector<128x128xf32>
      %16 = vector.extract_strided_slice %15 {offsets = [0, 32], sizes = [128, 1], strides = [1, 1]} : vector<128x128xf32> to vector<128x1xf32>
      %cst_11 = arith.constant 0.000000e+00 : f32
      %17 = vector.broadcast %cst_11 : f32 to vector<128x1xf32>
      %18 = arith.cmpf ogt, %16, %17 : vector<128x1xf32>
      %19 = tpu.reciprocal %16 : vector<128x1xf32> -> vector<128x1xf32>
      %cst_12 = arith.constant 0.000000e+00 : f32
      %20 = vector.broadcast %cst_12 : f32 to vector<128x1xf32>
      %21 = arith.select %18, %19, %20 : vector<128x1xi1>, vector<128x1xf32>
      %22 = vector.broadcast %21 : vector<128x1xf32> to vector<128x128xf32>
      %23 = arith.mulf %15, %22 : vector<128x128xf32>
      %c0_13 = arith.constant 0 : index
      %c0_14 = arith.constant 0 : index
      %24 = vector.load %arg4[%c0_13, %c0_14] : memref<128x256xbf16, #tpu.memory_space<vmem>>, vector<128x256xbf16>
      %25 = vector.extract_strided_slice %24 {offsets = [0, 0], sizes = [128, 128], strides = [1, 1]} : vector<128x256xbf16> to vector<128x128xbf16>
      %26 = arith.extf %25 : vector<128x128xbf16> to vector<128x128xf32>
      %27 = vector.extract_strided_slice %24 {offsets = [0, 128], sizes = [128, 128], strides = [1, 1]} : vector<128x256xbf16> to vector<128x128xbf16>
      %28 = arith.extf %27 : vector<128x128xbf16> to vector<128x128xf32>
      %29 = arith.addf %26, %28 : vector<128x128xf32>
      %c0_15 = arith.constant 0 : index
      %c0_16 = arith.constant 0 : index
      %30 = vector.load %arg5[%c0_15, %c0_16] : memref<128x128xf32, #tpu.memory_space<vmem>>, vector<128x128xf32>
      %cst_17 = arith.constant dense<0.000000e+00> : vector<128x128xf32>
      %31 = tpu.matmul %29, %30, %cst_17 {dimension_numbers = #tpu.dot_dimension_numbers<[1], [0], [0], [1], [0, 0, 1, 1], [], []>} : vector<128x128xf32>, vector<128x128xf32>, vector<128x128xf32> -> vector<128x128xf32>
      %c0_18 = arith.constant 0 : index
      %c0_19 = arith.constant 0 : index
      %32 = vector.load %arg6[%c0_18, %c0_19] : memref<128x128xf32, #tpu.memory_space<vmem>>, vector<128x128xf32>
      %cst_20 = arith.constant dense<0.000000e+00> : vector<128x128xf32>
      %33 = tpu.matmul %23, %32, %cst_20 {dimension_numbers = #tpu.dot_dimension_numbers<[1], [0], [0], [1], [0, 0, 1, 1], [], []>} : vector<128x128xf32>, vector<128x128xf32>, vector<128x128xf32> -> vector<128x128xf32>
      %34 = arith.addf %31, %33 : vector<128x128xf32>
      %c0_21 = arith.constant 0 : index
      %c0_22 = arith.constant 0 : index
      %35 = vector.load %arg7[%c0_21, %c0_22] : memref<1x128xf32, #tpu.memory_space<vmem>>, vector<1x128xf32>
      %36 = vector.broadcast %35 : vector<1x128xf32> to vector<128x128xf32>
      %37 = arith.addf %34, %36 : vector<128x128xf32>
      %cst_23 = arith.constant dense<0.000000e+00> : vector<128xf32>
      %38 = vector.multi_reduction <add>, %37, %cst_23 [1] : vector<128x128xf32> to vector<128xf32>
      %39 = vector.shape_cast %38 : vector<128xf32> to vector<128x1xf32>
      %40 = arith.mulf %37, %37 : vector<128x128xf32>
      %cst_24 = arith.constant dense<0.000000e+00> : vector<128xf32>
      %41 = vector.multi_reduction <add>, %40, %cst_24 [1] : vector<128x128xf32> to vector<128xf32>
      %42 = vector.shape_cast %41 : vector<128xf32> to vector<128x1xf32>
      %cst_25 = arith.constant 3.125000e-02 : f32
      %43 = vector.broadcast %cst_25 : f32 to vector<128x1xf32>
      %44 = arith.mulf %39, %43 : vector<128x1xf32>
      %cst_26 = arith.constant 3.125000e-02 : f32
      %45 = vector.broadcast %cst_26 : f32 to vector<128x1xf32>
      %46 = arith.mulf %42, %45 : vector<128x1xf32>
      %47 = arith.mulf %44, %44 : vector<128x1xf32>
      %48 = arith.subf %46, %47 : vector<128x1xf32>
      %49 = vector.broadcast %44 : vector<128x1xf32> to vector<128x128xf32>
      %50 = arith.subf %37, %49 : vector<128x128xf32>
      %cst_27 = arith.constant 9.99999974E-6 : f32
      %51 = vector.broadcast %cst_27 : f32 to vector<128x1xf32>
      %52 = arith.addf %48, %51 : vector<128x1xf32>
      %53 = math.rsqrt %52 : vector<128x1xf32>
      %54 = vector.broadcast %53 : vector<128x1xf32> to vector<128x128xf32>
      %55 = arith.mulf %50, %54 : vector<128x128xf32>
      %c0_28 = arith.constant 0 : index
      %c0_29 = arith.constant 0 : index
      %56 = vector.load %arg8[%c0_28, %c0_29] : memref<1x128xf32, #tpu.memory_space<vmem>>, vector<1x128xf32>
      %57 = vector.broadcast %56 : vector<1x128xf32> to vector<128x128xf32>
      %58 = arith.mulf %55, %57 : vector<128x128xf32>
      %c0_30 = arith.constant 0 : index
      %c0_31 = arith.constant 0 : index
      %59 = vector.load %arg9[%c0_30, %c0_31] : memref<1x128xf32, #tpu.memory_space<vmem>>, vector<1x128xf32>
      %60 = vector.broadcast %59 : vector<1x128xf32> to vector<128x128xf32>
      %61 = arith.addf %58, %60 : vector<128x128xf32>
      %cst_32 = arith.constant 0.000000e+00 : f32
      %62 = vector.broadcast %cst_32 : f32 to vector<128x128xf32>
      %63 = arith.maximumf %61, %62 : vector<128x128xf32>
      %c0_33 = arith.constant 0 : index
      %c0_34 = arith.constant 0 : index
      %64 = vector.load %arg10[%c0_33, %c0_34] : memref<128x128xf32, #tpu.memory_space<vmem>>, vector<128x128xf32>
      tpu.vector_store %arg10[%c0_33, %c0_34], %63 {strides = array<i32>} : memref<128x128xf32, #tpu.memory_space<vmem>>, vector<128x128xf32>,
    } else {
    }
    return
  }
  func.func @transform_0(%arg0: i32, %arg1: i32) -> (i32, i32) {
    %c0_i32 = arith.constant 0 : i32
    return %arg0, %arg1 : i32, i32
  }
  func.func @transform_1(%arg0: i32, %arg1: i32) -> (i32, i32) {
    %c0_i32 = arith.constant 0 : i32
    %c0_i32_0 = arith.constant 0 : i32
    return %arg1, %c0_i32 : i32, i32
  }
  func.func @transform_2(%arg0: i32, %arg1: i32) -> (i32, i32) {
    %c0_i32 = arith.constant 0 : i32
    %c0_i32_0 = arith.constant 0 : i32
    return %arg0, %c0_i32 : i32, i32
  }
  func.func @transform_3(%arg0: i32, %arg1: i32) -> (i32, i32) {
    %c0_i32 = arith.constant 0 : i32
    %c0_i32_0 = arith.constant 0 : i32
    %c0_i32_1 = arith.constant 0 : i32
    return %c0_i32, %c0_i32_0 : i32, i32
  }
  func.func @transform_4(%arg0: i32, %arg1: i32) -> (i32, i32) {
    %c0_i32 = arith.constant 0 : i32
    %c0_i32_0 = arith.constant 0 : i32
    %c0_i32_1 = arith.constant 0 : i32
    return %c0_i32, %c0_i32_0 : i32, i32
  }
  func.func @transform_5(%arg0: i32, %arg1: i32) -> (i32, i32) {
    %c0_i32 = arith.constant 0 : i32
    %c0_i32_0 = arith.constant 0 : i32
    %c0_i32_1 = arith.constant 0 : i32
    return %c0_i32, %c0_i32_0 : i32, i32
  }
  func.func @transform_6(%arg0: i32, %arg1: i32) -> (i32, i32) {
    %c0_i32 = arith.constant 0 : i32
    %c0_i32_0 = arith.constant 0 : i32
    %c0_i32_1 = arith.constant 0 : i32
    return %c0_i32, %c0_i32_0 : i32, i32
  }
  func.func @transform_7(%arg0: i32, %arg1: i32) -> (i32, i32) {
    %c0_i32 = arith.constant 0 : i32
    %c0_i32_0 = arith.constant 0 : i32
    %c0_i32_1 = arith.constant 0 : i32
    return %c0_i32, %c0_i32_0 : i32, i32
  }
  func.func @transform_8(%arg0: i32, %arg1: i32) -> (i32, i32) {
    %c0_i32 = arith.constant 0 : i32
    %c0_i32_0 = arith.constant 0 : i32
    return %arg0, %c0_i32 : i32, i32
  }
}

</mosaic_0001>

<bundles_post_ra>
// kernel: tpu_custom_call.1
= control target key start
LH: loop header
LB: loop body
LE: loop exit
PB: predicated region body
PF: predicated region fallthrough
CT: control target
= control target key end

     0   :  { %s3798_s0 = inlined_call_operand.hbm [shape: bf16[384,384], index: 0, kind: input, shape index: {}]   ;;  %s3799_s1 = inlined_call_operand.hbm [shape: bf16[384,256], index: 1, kind: input, shape index: {}]   ;;  %s3800_s2 = inlined_call_operand.hbm [shape: bf16[384,256], index: 2, kind: input, shape index: {}]   ;;  %s3801_s3 = inlined_call_operand.hbm [shape: f32[128,128], index: 3, kind: input, shape index: {}]   ;;  %s3802_s4 = inlined_call_operand.hbm [shape: f32[128,128], index: 4, kind: input, shape index: {}]   ;;  %s3803_s5 = inlined_call_operand.vmem [shape: f32[1,128], index: 5, kind: input, shape index: {}]   ;;  %s3804_s6 = inlined_call_operand.vmem [shape: f32[1,128], index: 6, kind: input, shape index: {}]   ;;  %s3805_s7 = inlined_call_operand.vmem [shape: f32[1,128], index: 7, kind: input, shape index: {}]   ;;  %s3806_s8 = inlined_call_operand.hbm [shape: f32[384,128], index: 8, kind: output, shape index: {}]  }
   0x1   :  { %3826 = sst [smem:[#allocation26_spill]] %s3798_s0 }
   0x2   :  { %3827 = sst [smem:[#allocation27_spill]] %s3799_s1 }
   0x3   :  { %3828 = sst [smem:[#allocation28_spill]] %s3801_s3 }
   0x4   :  { %3829 = sst [smem:[#allocation29_spill]] %s3803_s5 }
   0x5   :  { %3830 = sst [smem:[#allocation30_spill]] %s3804_s6 }
   0x6   :  { %3831 = sst [smem:[#allocation31_spill]] %s3805_s7 }
   0x7   :  { %3832 = sst [smem:[#allocation32_spill]] %s3806_s8 }
   0x8   :  { %13 = vsyncpa [#allocation4], 0 }
   0x9   :  { %15 = vsyncpa [#allocation4 + $0x1], 0 }
   0xa   :  { %16 = vsyncpa [#allocation7], 0 }
   0xb   :  { %18 = vsyncpa [#allocation7 + $0x1], 0 }
   0xc   :  { %19 = vsyncpa [#allocation10], 0 }
   0xd   :  { %20 = vsyncpa [#allocation5], 0 }
   0xe   :  { %22 = vsyncpa [#allocation5 + $0x1], 0  ;;  %s2928_s27 = smov 0   ;;  %s2930_s28 = smov 0  }
   0xf   :  { %s2932_s29 = smov 0   ;;  %s2934_s30 = smov 0  }
  0x10   :  { %s2936_s9 = smov 0   ;;  %s2938_s10 = smov 0  }
  0x11   :  { %s2940_s11 = smov 0   ;;  %s2942_s12 = smov 0  }
  0x12   :  { %s2944_s13 = smov 0   ;;  %s2946_s14 = smov 0  }
  0x13   :  { %s2948_s15 = smov 0   ;;  %s2950_s16 = smov 0  }
  0x14   :  { %s2952_s17 = smov 0   ;;  %s2954_s18 = smov 0  }
  0x15 LB: > { %3833 = sst [smem:[#allocation18_spill]] %s2829_s9  ;;  %s2999_s19 = sadd.s32 4294967295, %s2865_s18   ;;  %s2865_s18 = sphi %s2954_s18, %s28_s18   ;;  %s2861_s17 = sphi %s2952_s17, %s3902_s17   ;;  %s2857_s16 = sphi %s2950_s16, %s3901_s16   ;;  %s2853_s15 = sphi %s2948_s15, %s3900_s15   ;;  %s2849_s14 = sphi %s2946_s14, %s3899_s14   ;;  %s2845_s13 = sphi %s2944_s13, %s3898_s13   ;;  %s2841_s12 = sphi %s2942_s12, %s3897_s12   ;;  %s2837_s11 = sphi %s2940_s11, %s3896_s11   ;;  %s2833_s10 = sphi %s2938_s10, %s3890_s10   ;;  %s2829_s9 = sphi %s2936_s9, %s3889_s9   ;;  %s2825_s30 = sphi %s2934_s30, %s3888_s30   ;;  %s2821_s29 = sphi %s2932_s29, %s3895_s29   ;;  %s2817_s28 = sphi %s2930_s28, %s3894_s28   ;;  %s2813_s27 = sphi %s2928_s27, %s3893_s27  }
  0x16   : > { %3834 = sst [smem:[#allocation19_spill]] %s2833_s10  ;;  %p1961_p0 = scmp.ge.s32.totalorder %s2865_s18, 1 }
  0x17   : > { %3835 = sst [smem:[#allocation20_spill]] %s2849_s14  ;;  %p3808_p1 = scmp.eq.s32.totalorder %s2999_s19, 0 }
  0x18   : > { %3836 = sst [smem:[#allocation21_spill]] %s2853_s15  ;;  %p256_p3 = scmp.lt.s32.totalorder %s2865_s18, 10 }
  0x19   : > { %s2867_s21 = smov [#allocation9]   ;;  %s3839_s3 = sld [smem:[#allocation28_spill]] }
  0x1a   : > { %p3005_p4 = pnand %p1961_p0, %p256_p3  ;;  %s268_s22 = sshll.u32 %s2867_s21, 4  ;;  %s269_s22 = int_to_ptr.vmem [resolvable:$true] %s268_s22 }
  0x1c   : > { %s3837_s20 = scalar_select %p3005_p4, 1, 0 }
  0x1d   : > { %p2312_p5 = pneg %p3005_p4 }
  0x1f   : > { %p3013_p6 = pnand %p2312_p5, %p3808_p1  ;;  %s2561_s26 = scalar_lea.hbm %s3839_s3, 2048 }
  0x20   : > { %p2562_p7 = scmp.ne.s32.totalorder %s3839_s3, %s2561_s26  ;;  %p2568_p11 = scmp.lt.u32.totalorder %s2561_s26, %s3839_s3 }
  0x21   : > { %p3822_p8 = pneg %p3013_p6 }
  0x23   : > { %p2564_p9 = pnand %p3822_p8, %p2562_p7 }
  0x25   : > { %p2565_p10 = pneg %p2564_p9 }
  0x27   : > { %p2570_p12 = pnand %p2568_p11, %p2565_p10 }
  0x29   : > { %2573 = shalt.err (!%p2570_p12)
}
  0x2a   : > { %s2574_s24 = scalar_lea.vmem %s269_s22, 2048  ;;  %p2582_p5 = scmp.lt.s32.totalorder %s269_s22, %s269_s22 }
  0x2b   : > { %p2575_p13 = scmp.ne.s32.totalorder %s269_s22, %s2574_s24  ;;  %p2583_p2 = scmp.lt.s32.totalorder %s2574_s24, %s2574_s24 }
  0x2d   : > { %p2577_p0 = pnand %p2575_p13, %p3822_p8  ;;  %p2584_p1 = por %p2583_p2, %p2582_p5 }
  0x2f   : > { %p2578_p3 = pneg %p2577_p0 }
  0x31   : > { %p2585_p4 = pnand %p2584_p1, %p2578_p3 }
  0x33   : > { %2588 = shalt.err (!%p2585_p4)
}
  0x34   : > { %s3810_s8 = smov 128   ;;  %s3812_s7 = smov 8  }
  0x35   : > { %2315 = dma.hbm_to_vmem [thread:$0]  (!%p3013_p6), %s3839_s3, 2048, %s269_s22, [#allocation10], %s3810_s8, %s3810_s8, %s3812_s7  }
  0x36   : > { %s37_s26 = sadd.s32 1, %s2857_s16  ;;  %s40_s21 = sadd.s32 1, %s2861_s17 }
  0x37   : > { %p38_p1 = scmp.ge.s32.totalorder %s37_s26, 3  ;;  %p3821_p2 = scmp.eq.s32.totalorder %s2865_s18, 0 }
  0x38   : > { %s75_s24 = sadd.s32 1, %s2833_s10  ;;  %p82_p4 = scmp.ne.s32.totalorder %s2833_s10, %s2829_s9 }
  0x39   : > { %s3904_s26 = smov (%p38_p1, %s37_s26), 0  ;;  %s3906_s21 = smov (!%p38_p1, %s40_s21), %s2861_s17 }
  0x3a   : > { %3840 = sst [smem:[#allocation22_spill]] %s3904_s26  ;;  %s45_s6 = ssub.s32 %s2857_s16, %s3904_s26 }
  0x3b   : > { %p3055_p7 = por %p82_p4, %p3821_p2  ;;  %p42_p9 = scmp.ge.s32.totalorder %s3906_s21, 3 }
  0x3c   : > { %p73_p10 = scmp.eq.s32.totalorder %s45_s6, 0  ;;  %p88_p11 = scmp.ne.s32.totalorder %s2829_s9, %s2825_s30 }
  0x3d   : > { %p3820_p12 = scmp.lt.s32.totalorder %s2865_s18, 9  ;;  %s3908_s21 = smov (%p42_p9, %s3906_s21), 0 }
  0x3e   : > { %3842 = sst [smem:[#allocation23_spill]] %s3908_s21  ;;  %s3069_s25 = ssub.s32 %s2861_s17, %s3908_s21 }
  0x3f   : > { %s3065_s15 = scalar_select %p73_p10, %s2833_s10, %s75_s24  }
  0x40   : > { %p3844_p13 = scmp.eq.s32.totalorder %s2999_s19, 0  ;;  %s46_s7 = sor.u32 %s45_s6, %s3069_s25 }
  0x41   : > { %3843 = sst [smem:[#allocation24_spill]] %s3065_s15  ;;  %p3079_p5 = scmp.eq.s32.totalorder %s46_s7, 0 }
  0x42   : > { %p3073_p0 = por %p88_p11, %p3844_p13  ;;  %s327_s3 = sand.u32 1, %s2865_s18  }
  0x43   : > { %s3847_s30 = scalar_select %p3079_p5, 1, 0 }
  0x44   : > { %s3845_s8 = scalar_select %p3073_p0, 1, 0 }
  0x45   : > { %s329_s26 = sand.u32 1, %s2833_s10   ;;  %s2019_s24 = sshll.u32 %s2857_s16, 11 }
  0x46   : > { %3846 = sst [smem:[#allocation25_spill]] %s3845_s8  ;;  %s1969_s5 = sshll.u32 %s329_s26, 7 }
  0x47   : > { %s3848_s1 = sld [smem:[#allocation27_spill]]  ;;  %s331_s9 = scalar_lea.vmem [#allocation6], %s1969_s5 }
  0x48   : > { %s339_s6 = sshll.u32 %s331_s9, 4  ;;  %p3095_p1 = pnand %p3820_p12, %p3055_p7  ;;  %s3099_s6 = int_to_ptr.vmem [resolvable:$true] %s339_s6 }
  0x49   : > { %s2870_s26 = smov [#allocation11]   ;;  %s3103_s15 = scalar_lea.sflag [#allocation7], %s327_s3 }
  0x4a   : > { %s3101_s21 = sshll.u32 %s2870_s26, 4  ;;  %p2591_p9 = pneg %p3095_p1  ;;  %s282_s21 = int_to_ptr.vmem [resolvable:$true] %s3101_s21 }
  0x4d   : > { %s3089_s14 = scalar_lea.hbm %s3848_s1, %s2019_s24  ;;  %s2594_s22 = scalar_lea.hbm %s3848_s1, 6144 }
  0x4e   : > { %s2589_s24 = scalar_lea.hbm %s3089_s14, 2048  ;;  %p2595_p11 = scmp.lt.u32.totalorder %s3089_s14, %s3848_s1 }
  0x4f   : > { %p2590_p4 = scmp.ne.s32.totalorder %s3089_s14, %s2589_s24  ;;  %p2596_p13 = scmp.lt.u32.totalorder %s2594_s22, %s2589_s24 }
  0x50   : > { %p2598_p12 = scmp.lt.u32.totalorder %s2589_s24, %s3089_s14 }
  0x51   : > { %p2592_p10 = pnand %p2591_p9, %p2590_p4  ;;  %p2597_p3 = por %p2596_p13, %p2595_p11 }
  0x53   : > { %p2593_p7 = pneg %p2592_p10  ;;  %p2599_p2 = por %p2598_p12, %p2597_p3 }
  0x55   : > { %p2600_p8 = pnand %p2599_p2, %p2593_p7 }
  0x57   : > { %2603 = shalt.err (!%p2600_p8)
}
  0x58   : > { %s2604_s3 = scalar_lea.vmem %s3099_s6, 2048  ;;  %s2871_s26 = smov [#allocation6]  }
  0x59   : > { %p2605_p4 = scmp.ne.s32.totalorder %s3099_s6, %s2604_s3  ;;  %s2609_s5 = sshll.u32 %s2871_s26, 4  ;;  %s2610_s5 = int_to_ptr.vmem [resolvable:$false] %s2609_s5 }
  0x5a   : > { %s2611_s10 = scalar_lea.vmem %s2610_s5, 4096  ;;  %p2612_p5 = scmp.lt.s32.totalorder %s3099_s6, %s2610_s5 }
  0x5b   : > { %p2607_p10 = pnand %p2605_p4, %p2591_p9  ;;  %p2613_p11 = scmp.lt.s32.totalorder %s2611_s10, %s2604_s3 }
  0x5d   : > { %p2608_p0 = pneg %p2607_p10  ;;  %p2614_p13 = por %p2613_p11, %p2612_p5 }
  0x5f   : > { %p2615_p12 = pnand %p2614_p13, %p2608_p0 }
  0x61   : > { %2618 = shalt.err (!%p2615_p12)
}
  0x62   : > { %s3850_s8 = smov 8   ;;  %s3851_s24 = smov 128  }
  0x63   : > { %2325 = dma.hbm_to_vmem [thread:$0]  (!%p3095_p1), %s3089_s14, 2048, %s3099_s6, %s3103_s15, %s3851_s24, %s3851_s24, %s3850_s8  }
  0x64   : > { %s2619_s26 = scalar_lea.hbm %s3802_s4, 2048  ;;  %p3852_p2 = pneg %p3013_p6 }
  0x65   : > { %p2620_p8 = scmp.ne.s32.totalorder %s3802_s4, %s2619_s26  ;;  %p2626_p5 = scmp.lt.u32.totalorder %s2619_s26, %s3802_s4 }
  0x67   : > { %p2622_p0 = pnand %p2620_p8, %p3852_p2 }
  0x69   : > { %p2623_p3 = pneg %p2622_p0 }
  0x6b   : > { %p2628_p9 = pnand %p2626_p5, %p2623_p3 }
  0x6d   : > { %2631 = shalt.err (!%p2628_p9)
}
  0x6e   : > { %s2632_s14 = scalar_lea.vmem %s282_s21, 2048  ;;  %p3853_p7 = pmov %p3852_p2 }
  0x6f   : > { %p2633_p1 = scmp.ne.s32.totalorder %s282_s21, %s2632_s14  ;;  %p2640_p11 = scmp.lt.s32.totalorder %s282_s21, %s282_s21 }
  0x70   : > { %p2641_p13 = scmp.lt.s32.totalorder %s2632_s14, %s2632_s14 }
  0x71   : > { %p2635_p4 = pnand %p2633_p1, %p3853_p7 }
  0x72   : > { %p2642_p12 = por %p2641_p13, %p2640_p11 }
  0x73   : > { %p2636_p10 = pneg %p2635_p4 }
  0x75   : > { %p2643_p2 = pnand %p2642_p12, %p2636_p10 }
  0x77   : > { %2646 = shalt.err (!%p2643_p2)
}
  0x78   : > { %2318 = dma.hbm_to_vmem [thread:$0]  (!%p3013_p6), %s3802_s4, 2048, %s282_s21, [#allocation10], %s3851_s24, %s3851_s24, %s3850_s8  }
  0x79   : > { %s49_s23 = sadd.s32 1, %s2845_s13  ;;  %p3854_p8 = scmp.ne.s32.totalorder %s3847_s30, 0 }
  0x7a   : > { %p56_p0 = scmp.ne.s32.totalorder %s2845_s13, %s2841_s12  ;;  %p62_p3 = scmp.ne.s32.totalorder %s2841_s12, %s2837_s11 }
  0x7b   : > { %s3162_s22 = scalar_select %p3854_p8, %s2845_s13, %s49_s23  }
  0x7c   : > { %s304_s26 = sand.u32 1, %s2845_s13   ;;  %s2295_s3 = smul.u32 48, %s2861_s17 }
  0x7d   : > { %p3855_p5 = scmp.eq.s32.totalorder %s2865_s18, 0  ;;  %p3856_p1 = scmp.eq.s32.totalorder %s2999_s19, 0 }
  0x7e   : > { %s1965_s7 = sshll.u32 %s304_s26, 6  ;;  %s314_s10 = sadd.s32 %s2857_s16, %s2295_s3 }
  0x7f   : > { %p58_p9 = por %p3855_p5, %p56_p0  ;;  %p3174_p7 = por %p3856_p1, %p62_p3 }
  0x80   : > { %s1968_s14 = sshll.u32 %s314_s10, 6  ;;  %s308_s21 = scalar_lea.vmem [#allocation3], %s1965_s7 }
  0x81   : > { %s317_s6 = sshll.u32 %s308_s21, 4  ;;  %s3858_s0 = sld [smem:[#allocation26_spill]]  ;;  %s3184_s6 = int_to_ptr.vmem [resolvable:$true] %s317_s6 }
  0x82   : > { %p3859_p6 = scmp.lt.s32.totalorder %s2865_s18, 9  ;;  %s3192_s3 = scalar_lea.sflag [#allocation4], %s304_s26 }
  0x84   : > { %p3188_p4 = pnand %p3859_p6, %p58_p9 }
  0x86   : > { %p2649_p11 = pneg %p3188_p4 }
  0x87   : > { %s3182_s23 = scalar_lea.hbm %s3858_s0, %s1968_s14  ;;  %s2652_s21 = scalar_lea.hbm %s3858_s0, 9216 }
  0x88   : > { %s2647_s7 = scalar_lea.hbm %s3182_s23, 1024  ;;  %p2653_p2 = scmp.lt.u32.totalorder %s3182_s23, %s3858_s0 }
  0x89   : > { %p2648_p10 = scmp.ne.s32.totalorder %s3182_s23, %s2647_s7  ;;  %p2654_p8 = scmp.lt.u32.totalorder %s2652_s21, %s2647_s7 }
  0x8a   : > { %p2656_p3 = scmp.lt.u32.totalorder %s2647_s7, %s3182_s23 }
  0x8b   : > { %p2650_p13 = pnand %p2649_p11, %p2648_p10  ;;  %p2655_p0 = por %p2654_p8, %p2653_p2 }
  0x8d   : > { %p2651_p12 = pneg %p2650_p13  ;;  %p2657_p5 = por %p2656_p3, %p2655_p0 }
  0x8f   : > { %p2658_p9 = pnand %p2657_p5, %p2651_p12 }
  0x91   : > { %2661 = shalt.err (!%p2658_p9)
}
  0x92   : > { %s2662_s26 = scalar_lea.vmem %s3184_s6, 1024  ;;  %s2872_s10 = smov [#allocation3]  }
  0x93   : > { %p2663_p1 = scmp.ne.s32.totalorder %s3184_s6, %s2662_s26  ;;  %s2667_s14 = sshll.u32 %s2872_s10, 4  ;;  %s2668_s14 = int_to_ptr.vmem [resolvable:$false] %s2667_s14 }
  0x94   : > { %s2669_s9 = scalar_lea.vmem %s2668_s14, 2048  ;;  %p2670_p13 = scmp.lt.s32.totalorder %s3184_s6, %s2668_s14 }
  0x95   : > { %p2665_p6 = pnand %p2663_p1, %p2649_p11  ;;  %p2671_p2 = scmp.lt.s32.totalorder %s2669_s9, %s2662_s26 }
  0x97   : > { %p2666_p10 = pneg %p2665_p6  ;;  %p2672_p8 = por %p2671_p2, %p2670_p13 }
  0x99   : > { %p2673_p0 = pnand %p2672_p8, %p2666_p10 }
  0x9b   : > { %2676 = shalt.err (!%p2673_p0)
}
  0x9c   : > { %s2873_s7 = smov 192   ;;  %s2874_s21 = smov 64  }
  0x9d   : > { %s2875_s30 = smov 4   ;;  %s1960_s26 = sadd.s32 4294967294, %s2865_s18  }
  0x9e   : > { %2322 = dma.hbm_to_vmem [thread:$0]  (!%p3188_p4), %s3182_s23, 1024, %s3184_s6, %s3192_s3, %s2873_s7, %s2874_s21, %s2875_s30  }
  0x9f   : > { %s101_s10 = sadd.s32 1, %s2821_s29  ;;  %p108_p11 = scmp.ne.s32.totalorder %s2821_s29, %s2817_s28 }
  0xa0   : > { %p3861_p12 = scmp.eq.s32.totalorder %s3069_s25, 0  ;;  %p3862_p3 = scmp.eq.s32.totalorder %s2865_s18, 0 }
  0xa1   : > { %p114_p9 = scmp.ne.s32.totalorder %s2817_s28, %s2813_s27  ;;  %p3864_p1 = scmp.eq.s32.totalorder %s2999_s19, 8 }
  0xa2   : > { %s3227_s14 = scalar_select %p3861_p12, %s2821_s29, %s101_s10  }
  0xa3   : > { %p3231_p5 = por %p108_p11, %p3862_p3  ;;  %p3239_p6 = por %p3864_p1, %p108_p11 }
  0xa4   : > { %p249_p4 = scmp.eq.s32.totalorder %s1960_s26, 8  ;;  %p3866_p10 = scmp.eq.s32.totalorder %s2999_s19, 0 }
  0xa5   : > { %s3865_s0 = scalar_select %p3239_p6, 1, 0 }
  0xa6   : > { %p3245_p13 = por %p114_p9, %p3866_p10  ;;  %s351_s25 = sand.u32 1, %s2821_s29  }
  0xa7   : > { %p3250_p2 = por %p249_p4, %p114_p9  ;;  %s1973_s11 = sshll.u32 %s351_s25, 7 }
  0xa8   : > { %s3867_s6 = scalar_select %p3245_p13, 1, 0 }
  0xa9   : > { %s3868_s23 = scalar_select %p3250_p2, 1, 0 }
  0xaa   : > { %s2021_s3 = sshll.u32 %s2861_s17, 11  ;;  %s353_s26 = scalar_lea.vmem [#allocation8], %s1973_s11 }
  0xab   : > { %s3258_s30 = scalar_lea.hbm %s3800_s2, %s2021_s3  ;;  %s361_s10 = sshll.u32 %s353_s26, 4  ;;  %s3260_s10 = int_to_ptr.vmem [resolvable:$true] %s361_s10 }
  0xac   : > { %p3869_p8 = scmp.lt.s32.totalorder %s2865_s18, 9  ;;  %s2677_s25 = scalar_lea.hbm %s3258_s30, 2048 }
  0xad   : > { %p2678_p11 = scmp.ne.s32.totalorder %s3258_s30, %s2677_s25  ;;  %s2682_s7 = scalar_lea.hbm %s3800_s2, 6144 }
  0xae   : > { %p3266_p0 = pnand %p3869_p8, %p3231_p5  ;;  %p2683_p5 = scmp.lt.u32.totalorder %s3258_s30, %s3800_s2 }
  0xaf   : > { %p2684_p1 = scmp.lt.u32.totalorder %s2682_s7, %s2677_s25  ;;  %p2686_p10 = scmp.lt.u32.totalorder %s2677_s25, %s3258_s30 }
  0xb0   : > { %p2679_p12 = pneg %p3266_p0 }
  0xb1   : > { %p2685_p4 = por %p2684_p1, %p2683_p5 }
  0xb2   : > { %p2680_p3 = pnand %p2679_p12, %p2678_p11 }
  0xb3   : > { %p2687_p8 = por %p2686_p10, %p2685_p4 }
  0xb4   : > { %p2681_p9 = pneg %p2680_p3 }
  0xb6   : > { %p2688_p2 = pnand %p2687_p8, %p2681_p9 }
  0xb8   : > { %2691 = shalt.err (!%p2688_p2)
}
  0xb9   : > { %s2692_s26 = scalar_lea.vmem %s3260_s10, 2048  ;;  %s2876_s11 = smov [#allocation8]  }
  0xba   : > { %p2693_p11 = scmp.ne.s32.totalorder %s3260_s10, %s2692_s26  ;;  %s2697_s3 = sshll.u32 %s2876_s11, 4  ;;  %s2698_s3 = int_to_ptr.vmem [resolvable:$false] %s2697_s3 }
  0xbb   : > { %s2699_s9 = scalar_lea.vmem %s2698_s3, 4096  ;;  %p2700_p13 = scmp.lt.s32.totalorder %s3260_s10, %s2698_s3 }
  0xbc   : > { %p2695_p3 = pnand %p2693_p11, %p2679_p12  ;;  %p2701_p5 = scmp.lt.s32.totalorder %s2699_s9, %s2692_s26 }
  0xbe   : > { %p2696_p6 = pneg %p2695_p3  ;;  %p2702_p1 = por %p2701_p5, %p2700_p13 }
  0xc0   : > { %p2703_p4 = pnand %p2702_p1, %p2696_p6 }
  0xc2   : > { %2706 = shalt.err (!%p2703_p4)
}
  0xc3   : > { %2328 = dma.hbm_to_vmem [thread:$0]  (!%p3266_p0), %s3258_s30, 2048, %s3260_s10, %s3103_s15, %s3851_s24, %s3851_s24, %s3850_s8  }
  0xc4   : > { %p3871_p2 = scmp.ne.s32.totalorder %s3837_s20, 0 }
  0xc5   : > { %s375_s25 = sand.u32 (!%p3871_p2), 1, %s2841_s12  }
  0xc6   : > { %373 = sbr.rel (%p3871_p2) target bundleno = 1138 (0x472), region = 52  ;;  %s1978_s7 = sshll.u32 (!%p3871_p2), %s375_s25, 6 }
  0xc7   : > { %s376_s21 = scalar_lea.sflag (!%p3871_p2), [#allocation4], %s375_s25  ;;  %s3302_s26 = scalar_lea.vmem (!%p3871_p2), [#allocation3], %s1978_s7 }
  0xcd   : > { %2792 = dma.done.wait (%p3174_p7), %s376_s21, 1024  }
  0xce   : > { %2794 = vsyncadd (%p3174_p7), %s376_s21, 4294966272  ;;  %s3872_s1 = sld [smem:[#allocation18_spill]]  ;;  %s3873_s11 = sld [smem:[#allocation25_spill]] }
  0xcf   : > { %s384_s3 = sand.u32 1, %s2999_s19  }
  0xd0   : > { %s385_s20 = scalar_lea.sflag [#allocation7], %s384_s3 }
  0xd4   : > { %s386_s15 = sand.u32 1, %s3872_s1   ;;  %p3874_p6 = scmp.ne.s32.totalorder %s3873_s11, 0 }
  0xd5   : > { %s1979_s8 = sshll.u32 %s386_s15, 7 }
  0xd6   : > { %s3310_s24 = scalar_lea.vmem [#allocation6], %s1979_s8 }
  0xd7   : > { %2796 = dma.done.wait (%p3874_p6), %s385_s20, 2048  }
  0xd8   : > { %2798 = vsyncadd (%p3874_p6), %s385_s20, 4294965248  ;;  %s395_s30 = sand.u32 1, %s2817_s28   ;;  %p3875_p7 = scmp.ne.s32.totalorder %s3867_s6, 0 }
  0xd9   : > { %s1980_s5 = sshll.u32 %s395_s30, 7 }
  0xda   : > { %s3319_s10 = scalar_lea.vmem [#allocation8], %s1980_s5 }
  0xdb   : > { %2800 = dma.done.wait (%p3875_p7), %s385_s20, 2048  }
  0xdc   : > { %2802 = vsyncadd (%p3875_p7), %s385_s20, 4294965248  ;;  %p3876_p13 = scmp.eq.s32.totalorder %s2999_s19, 0 }
  0xde   : > { %2804 = dma.done.wait (%p3876_p13), [#allocation10], 4096   ;;  %p3877_p0 = pmov %p3876_p13 }
  0xdf   : > { %s3329_s9 = scalar_lea.vmem [#allocation12], %s1980_s5  ;;  %s3878_s25 = sld [smem:[#allocation20_spill]] }
  0xe0   : > { %2806 = vsyncadd (%p3877_p0), [#allocation10], 4294963200 }
  0xe5   : > { %p1984_p12 = scmp.ne.s32.totalorder %s3878_s25, 0 }
  0xe6   : > { %v2877_v0 = vmov (!%p1984_p12), 0.0  }
  0xe7   : > { %456 = sbr.rel (%p1984_p12) target bundleno = 247 (0xf7), region = 76  ;;  %457 = vst [vmem:[#allocation2] sm:$0xff] (!%p1984_p12), %v2877_v0  ;;  %458 = vst [vmem:[#allocation2 + $0x8] sm:$0xff] (!%p1984_p12), %v2877_v0 }
  0xe8   : > { %459 = vst [vmem:[#allocation2 + $0x10] sm:$0xff] (!%p1984_p12), %v2877_v0  ;;  %460 = vst [vmem:[#allocation2 + $0x18] sm:$0xff] (!%p1984_p12), %v2877_v0 }
  0xe9   : > { %461 = vst [vmem:[#allocation2 + $0x20] sm:$0xff] (!%p1984_p12), %v2877_v0  ;;  %462 = vst [vmem:[#allocation2 + $0x28] sm:$0xff] (!%p1984_p12), %v2877_v0 }
  0xea   : > { %463 = vst [vmem:[#allocation2 + $0x30] sm:$0xff] (!%p1984_p12), %v2877_v0  ;;  %464 = vst [vmem:[#allocation2 + $0x38] sm:$0xff] (!%p1984_p12), %v2877_v0 }
  0xeb   : > { %465 = vst [vmem:[#allocation2 + $0x40] sm:$0xff] (!%p1984_p12), %v2877_v0  ;;  %466 = vst [vmem:[#allocation2 + $0x48] sm:$0xff] (!%p1984_p12), %v2877_v0 }
  0xec   : > { %467 = vst [vmem:[#allocation2 + $0x50] sm:$0xff] (!%p1984_p12), %v2877_v0  ;;  %468 = vst [vmem:[#allocation2 + $0x58] sm:$0xff] (!%p1984_p12), %v2877_v0 }
  0xed   : > { %469 = vst [vmem:[#allocation2 + $0x60] sm:$0xff] (!%p1984_p12), %v2877_v0  ;;  %470 = vst [vmem:[#allocation2 + $0x68] sm:$0xff] (!%p1984_p12), %v2877_v0 }
  0xee   : > { %471 = vst [vmem:[#allocation2 + $0x70] sm:$0xff] %v2877_v0  ;;  %472 = vst [vmem:[#allocation2 + $0x78] sm:$0xff] %v2877_v0 }
  0xef   : > { %473 = vst [vmem:[#allocation2 + $0x80] sm:$0xff] %v2877_v0  ;;  %474 = vst [vmem:[#allocation2 + $0x88] sm:$0xff] %v2877_v0 }
  0xf0   : > { %475 = vst [vmem:[#allocation2 + $0x90] sm:$0xff] %v2877_v0  ;;  %476 = vst [vmem:[#allocation2 + $0x98] sm:$0xff] %v2877_v0 }
  0xf1   : > { %477 = vst [vmem:[#allocation2 + $0xa0] sm:$0xff] %v2877_v0  ;;  %478 = vst [vmem:[#allocation2 + $0xa8] sm:$0xff] %v2877_v0 }
  0xf2   : > { %479 = vst [vmem:[#allocation2 + $0xb0] sm:$0xff] %v2877_v0  ;;  %480 = vst [vmem:[#allocation2 + $0xb8] sm:$0xff] %v2877_v0 }
  0xf3   : > { %481 = vst [vmem:[#allocation2 + $0xc0] sm:$0xff] %v2877_v0  ;;  %482 = vst [vmem:[#allocation2 + $0xc8] sm:$0xff] %v2877_v0 }
  0xf4   : > { %483 = vst [vmem:[#allocation2 + $0xd0] sm:$0xff] %v2877_v0  ;;  %484 = vst [vmem:[#allocation2 + $0xd8] sm:$0xff] %v2877_v0 }
  0xf5   : > { %485 = vst [vmem:[#allocation2 + $0xe0] sm:$0xff] %v2877_v0  ;;  %486 = vst [vmem:[#allocation2 + $0xe8] sm:$0xff] %v2877_v0 }
  0xf6   : > { %487 = vst [vmem:[#allocation2 + $0xf0] sm:$0xff] %v2877_v0  ;;  %488 = vst [vmem:[#allocation2 + $0xf8] sm:$0xff] %v2877_v0 }
  0xf7 PF: > { %v2463_v1 = vld [vmem:[%s3310_s24 + $0x4] ss:$8 sps:$4 sm:$0xff]   ;;  %v2465_v2 = vld [vmem:[%s3310_s24] ss:$8 sps:$4 sm:$0xff]   ;;  %v2878_v3 = vmov 0   ;;  %v2491_v22 = vld [vmem:[%s3302_s26 + $0x10] sm:$0xff]  }
  0xf8   : > { %713 = vmatprep.mubr.bf16.mxu0 %v2878_v3  ;;  %753 = vmatprep.mubr.bf16.mxu1 %v2878_v3  ;;  %v2466_v4 = vld [vmem:[%s3310_s24 + $0x14] ss:$8 sps:$4 sm:$0xff]   ;;  %v2468_v5 = vld [vmem:[%s3310_s24 + $0x10] ss:$8 sps:$4 sm:$0xff]   ;;  %v2469_v6 = vld [vmem:[%s3310_s24 + $0x24] ss:$8 sps:$4 sm:$0xff]  }
  0xf9   : > { %681 = vmatprep.subr.bf16.mxu0 %v2463_v1  ;;  %2263 = vmatprep.subr.bf16.mxu1 %v2463_v1  ;;  %v2471_v7 = vld [vmem:[%s3310_s24 + $0x20] ss:$8 sps:$4 sm:$0xff]   ;;  %v2472_v8 = vld [vmem:[%s3310_s24 + $0x34] ss:$8 sps:$4 sm:$0xff]   ;;  %v2474_v9 = vld [vmem:[%s3310_s24 + $0x30] ss:$8 sps:$4 sm:$0xff]  }
  0xfa   : > { %682 = vmatpush1.bf16.msra.mxu0 %v2465_v2  ;;  %2271 = vmatpush1.bf16.msra.mxu1 %v2465_v2  ;;  %v2475_v10 = vld [vmem:[%s3310_s24 + $0x44] ss:$8 sps:$4 sm:$0xff]   ;;  %v2477_v11 = vld [vmem:[%s3310_s24 + $0x40] ss:$8 sps:$4 sm:$0xff]   ;;  %v2478_v12 = vld [vmem:[%s3310_s24 + $0x54] ss:$8 sps:$4 sm:$0xff]  }
  0xfb   : > { %683 = vmatprep.subr.bf16.mxu0 %v2466_v4  ;;  %2264 = vmatprep.subr.bf16.mxu1 %v2466_v4  ;;  %v2480_v13 = vld [vmem:[%s3310_s24 + $0x50] ss:$8 sps:$4 sm:$0xff]   ;;  %v2481_v14 = vld [vmem:[%s3310_s24 + $0x64] ss:$8 sps:$4 sm:$0xff]   ;;  %v2483_v15 = vld [vmem:[%s3310_s24 + $0x60] ss:$8 sps:$4 sm:$0xff]  }
  0xfc   : > { %v2484_v16 = vld [vmem:[%s3310_s24 + $0x74] ss:$8 sps:$4 sm:$0xff]   ;;  %v2486_v17 = vld [vmem:[%s3310_s24 + $0x70] ss:$8 sps:$4 sm:$0xff]   ;;  %v2487_v18 = vld [vmem:[%s3302_s26] sm:$0xff]   ;;  %s3879_s19 = sld [smem:[#allocation20_spill]] }
  0xfd   : > { %v2488_v19 = vld [vmem:[%s3302_s26 + $0x20] sm:$0xff]   ;;  %v2489_v20 = vld [vmem:[%s3302_s26 + $0x8] sm:$0xff]   ;;  %v2492_v23 = vld [vmem:[%s3302_s26 + $0x30] sm:$0xff]  }
  0xfe   : > { %684 = vmatpush1.bf16.msra.mxu0 %v2468_v5  ;;  %2272 = vmatpush1.bf16.msra.mxu1 %v2468_v5  ;;  %v2490_v21 = vld [vmem:[%s3302_s26 + $0x28] sm:$0xff]   ;;  %v2493_v24 = vld [vmem:[%s3302_s26 + $0x18] sm:$0xff]   ;;  %v489_v26 = vld [vmem:[#allocation2] sm:$0xff] }
  0xff   : > { %685 = vmatprep.subr.bf16.mxu0 %v2469_v6  ;;  %2265 = vmatprep.subr.bf16.mxu1 %v2469_v6  ;;  %v2494_v25 = vld [vmem:[%s3302_s26 + $0x38] sm:$0xff]   ;;  %v505_v27 = vld [vmem:[#allocation2 + $0x80] sm:$0xff]  ;;  %v490_v28 = vld [vmem:[#allocation2 + $0x8] sm:$0xff] }
 0x100   : > { %v506_v29 = vld [vmem:[#allocation2 + $0x88] sm:$0xff]  ;;  %v491_v32 = vld [vmem:[#allocation2 + $0x10] sm:$0xff]  ;;  %v492_v38 = vld [vmem:[#allocation2 + $0x18] sm:$0xff] }
 0x101   : > { %v507_v33 = vld [vmem:[#allocation2 + $0x90] sm:$0xff]  ;;  %v508_v39 = vld [vmem:[#allocation2 + $0x98] sm:$0xff]  ;;  %v493_v50 = vld [vmem:[#allocation2 + $0x20] sm:$0xff] }
 0x102   : > { %686 = vmatpush1.bf16.msra.mxu0 %v2471_v7  ;;  %2273 = vmatpush1.bf16.msra.mxu1 %v2471_v7  ;;  %v509_v51 = vld [vmem:[#allocation2 + $0xa0] sm:$0xff]  ;;  %v494_v52 = vld [vmem:[#allocation2 + $0x28] sm:$0xff]  ;;  %v495_v56 = vld [vmem:[#allocation2 + $0x30] sm:$0xff]  ;;  %p2009_p9 = scmp.ne.s32.totalorder %s3879_s19, 2 }
 0x103   : > { %687 = vmatprep.subr.bf16.mxu0 %v2472_v8  ;;  %2266 = vmatprep.subr.bf16.mxu1 %v2472_v8  ;;  %v510_v53 = vld [vmem:[#allocation2 + $0xa8] sm:$0xff]  ;;  %v511_v57 = vld [vmem:[#allocation2 + $0xb0] sm:$0xff]  ;;  %v496_v62 = vld [vmem:[#allocation2 + $0x38] sm:$0xff]  ;;  %s3880_s21 = sld [smem:[#allocation29_spill]] (!%p2009_p9)  ;;  %s3881_s11 = sld [smem:[#allocation30_spill]] (!%p2009_p9) }
 0x104   : > { %v512_v63 = vld [vmem:[#allocation2 + $0xb8] sm:$0xff]  ;;  %s3882_s8 = sld [smem:[#allocation31_spill]] (!%p2009_p9) }
 0x106   : > { %688 = vmatpush1.bf16.msra.mxu0 %v2474_v9  ;;  %2274 = vmatpush1.bf16.msra.mxu1 %v2474_v9 }
 0x107   : > { %689 = vmatprep.subr.bf16.mxu0 %v2475_v10  ;;  %2267 = vmatprep.subr.bf16.mxu1 %v2475_v10  ;;  %v497_v10 = vld [vmem:[#allocation2 + $0x40] sm:$0xff] }
 0x10a   : > { %690 = vmatpush1.bf16.msra.mxu0 %v2477_v11  ;;  %2275 = vmatpush1.bf16.msra.mxu1 %v2477_v11  ;;  %v513_v11 = vld [vmem:[#allocation2 + $0xc0] sm:$0xff] }
 0x10b   : > { %691 = vmatprep.subr.bf16.mxu0 %v2478_v12  ;;  %2268 = vmatprep.subr.bf16.mxu1 %v2478_v12  ;;  %v498_v12 = vld [vmem:[#allocation2 + $0x48] sm:$0xff] }
 0x10e   : > { %692 = vmatpush1.bf16.msra.mxu0 %v2480_v13  ;;  %2276 = vmatpush1.bf16.msra.mxu1 %v2480_v13  ;;  %v514_v13 = vld [vmem:[#allocation2 + $0xc8] sm:$0xff] }
 0x10f   : > { %693 = vmatprep.subr.bf16.mxu0 %v2481_v14  ;;  %2269 = vmatprep.subr.bf16.mxu1 %v2481_v14 }
 0x112   : > { %694 = vmatpush1.bf16.msra.mxu0 %v2483_v15  ;;  %2277 = vmatpush1.bf16.msra.mxu1 %v2483_v15 }
 0x113   : > { %695 = vmatprep.subr.bf16.mxu0 %v2484_v16  ;;  %2270 = vmatprep.subr.bf16.mxu1 %v2484_v16  ;;  %v499_v16 = vld [vmem:[#allocation2 + $0x50] sm:$0xff] }
 0x116   : > { %696 = vmatpush1.bf16.msra.mxu0 %v2486_v17  ;;  %2278 = vmatpush1.bf16.msra.mxu1 %v2486_v17  ;;  %v515_v17 = vld [vmem:[#allocation2 + $0xd0] sm:$0xff] }
 0x119   : > { %714 = vmatmul.mubr.bf16.vlgmr.msra.gmra.mrb[0].mxu0 %v2487_v18  ;;  %754 = vmatmul.mubr.bf16.vlgmr.msra.gmra.mrb[0].mxu1 %v2488_v19 }
 0x11a   : > { %723 = vmatprep.mubr.bf16.mxu0 %v2878_v3  ;;  %763 = vmatprep.mubr.bf16.mxu1 %v2878_v3 }
 0x121   : > { %724 = vmatmul.mubr.bf16.gmra.mrb[4].mxu0 %v2489_v20  ;;  %764 = vmatmul.mubr.bf16.gmra.mrb[4].mxu1 %v2490_v21 }
 0x122   : > { %733 = vmatprep.mubr.bf16.mxu0 %v2878_v3  ;;  %773 = vmatprep.mubr.bf16.mxu1 %v2878_v3 }
 0x129   : > { %734 = vmatmul.mubr.bf16.gmra.mrb[8].mxu0 %v2491_v22  ;;  %774 = vmatmul.mubr.bf16.gmra.mrb[8].mxu1 %v2492_v23  ;;  %v500_v22 = vld [vmem:[#allocation2 + $0x58] sm:$0xff] }
 0x12a   : > { %743 = vmatprep.mubr.bf16.mxu0 %v2878_v3  ;;  %783 = vmatprep.mubr.bf16.mxu1 %v2878_v3  ;;  %v516_v23 = vld [vmem:[#allocation2 + $0xd8] sm:$0xff] }
 0x131   : > { %744 = vmatmul.mubr.bf16.gmra.mrb[12].mxu0 %v2493_v24  ;;  %784 = vmatmul.mubr.bf16.gmra.mrb[12].mxu1 %v2494_v25 }
 0x1ec   : > { %v715_v30 = vpop.f32.mrb[0].mxu0  ;;  %v755_v31 = vpop.f32.mrb[0].mxu1 }
 0x1ed   : > { %v794_v34 = vadd.f32 %v715_v30, %v489_v26  ;;  %v810_v35 = vadd.f32 %v755_v31, %v505_v27  ;;  %v717_v36 = vpop.f32.mrb[1].mxu0  ;;  %v757_v37 = vpop.f32.mrb[1].mxu1 }
 0x1ee   : > { %v795_v40 = vadd.f32 %v717_v36, %v490_v28  ;;  %v811_v41 = vadd.f32 %v757_v37, %v506_v29  ;;  %v719_v42 = vpop.f32.mrb[2].mxu0  ;;  %v759_v43 = vpop.f32.mrb[2].mxu1  ;;  %v502_v36 = vld [vmem:[#allocation2 + $0x68] sm:$0xff] }
 0x1ef   : > { %826 = vst [vmem:[#allocation2] sm:$0xff] %v794_v34  ;;  %842 = vst [vmem:[#allocation2 + $0x80] sm:$0xff] %v810_v35  ;;  %v796_v44 = vadd.f32 %v719_v42, %v491_v32  ;;  %v812_v45 = vadd.f32 %v759_v43, %v507_v33  ;;  %v721_v46 = vpop.f32.mrb[3].mxu0  ;;  %v761_v47 = vpop.f32.mrb[3].mxu1  ;;  %v501_v34 = vld [vmem:[#allocation2 + $0x60] sm:$0xff]  ;;  %v518_v37 = vld [vmem:[#allocation2 + $0xe8] sm:$0xff] }
 0x1f0   : > { %827 = vst [vmem:[#allocation2 + $0x8] sm:$0xff] %v795_v40  ;;  %843 = vst [vmem:[#allocation2 + $0x88] sm:$0xff] %v811_v41  ;;  %v797_v48 = vadd.f32 %v721_v46, %v492_v38  ;;  %v813_v49 = vadd.f32 %v761_v47, %v508_v39  ;;  %v517_v35 = vld [vmem:[#allocation2 + $0xe0] sm:$0xff]  ;;  %v503_v40 = vld [vmem:[#allocation2 + $0x70] sm:$0xff] }
 0x1f1   : > { %828 = vst [vmem:[#allocation2 + $0x10] sm:$0xff] %v796_v44  ;;  %844 = vst [vmem:[#allocation2 + $0x90] sm:$0xff] %v812_v45  ;;  %v519_v41 = vld [vmem:[#allocation2 + $0xf0] sm:$0xff]  ;;  %v504_v46 = vld [vmem:[#allocation2 + $0x78] sm:$0xff] }
 0x1f2   : > { %829 = vst [vmem:[#allocation2 + $0x18] sm:$0xff] %v797_v48  ;;  %845 = vst [vmem:[#allocation2 + $0x98] sm:$0xff] %v813_v49  ;;  %v520_v47 = vld [vmem:[#allocation2 + $0xf8] sm:$0xff] }
 0x1f4   : > { %v725_v54 = vpop.f32.mrb[4].mxu0  ;;  %v765_v55 = vpop.f32.mrb[4].mxu1 }
 0x1f5   : > { %v798_v58 = vadd.f32 %v725_v54, %v493_v50  ;;  %v814_v59 = vadd.f32 %v765_v55, %v509_v51  ;;  %v727_v60 = vpop.f32.mrb[5].mxu0  ;;  %v767_v61 = vpop.f32.mrb[5].mxu1 }
 0x1f6   : > { %v799_v0 = vadd.f32 %v727_v60, %v494_v52  ;;  %v815_v1 = vadd.f32 %v767_v61, %v510_v53  ;;  %v729_v2 = vpop.f32.mrb[6].mxu0  ;;  %v769_v3 = vpop.f32.mrb[6].mxu1  ;;  %v862_v60 = vld [vmem:[#allocation2] sm:$0xff] (!%p2009_p9)  ;;  %v2879_v61 = vmov (!%p2009_p9), 32  }
 0x1f7   : > { %830 = vst [vmem:[#allocation2 + $0x20] sm:$0xff] %v798_v58  ;;  %846 = vst [vmem:[#allocation2 + $0xa0] sm:$0xff] %v814_v59  ;;  %v800_v4 = vadd.f32 %v729_v2, %v495_v56  ;;  %v816_v5 = vadd.f32 %v769_v3, %v511_v57  ;;  %v731_v6 = vpop.f32.mrb[7].mxu0  ;;  %v771_v7 = vpop.f32.mrb[7].mxu1  ;;  %2496 = vset.pattern.permute.xlu1 (!%p2009_p9), %v2879_v61  ;;  %2495 = vset.pattern.permute.xlu0 (!%p2009_p9), %v2879_v61 }
 0x1f8   : > { %831 = vst [vmem:[#allocation2 + $0x28] sm:$0xff] %v799_v0  ;;  %847 = vst [vmem:[#allocation2 + $0xa8] sm:$0xff] %v815_v1  ;;  %v801_v8 = vadd.f32 %v731_v6, %v496_v62  ;;  %v817_v9 = vadd.f32 %v771_v7, %v512_v63  ;;  %v863_v63 = vld [vmem:[#allocation2 + $0x8] sm:$0xff] (!%p2009_p9) }
 0x1f9   : > { %832 = vst [vmem:[#allocation2 + $0x30] sm:$0xff] %v800_v4  ;;  %848 = vst [vmem:[#allocation2 + $0xb0] sm:$0xff] %v816_v5  ;;  %v3367_v2 = vadd.f32 (!%p2009_p9), %v863_v63, %v862_v60  ;;  %v864_v4 = vld [vmem:[#allocation2 + $0x10] sm:$0xff] (!%p2009_p9)  ;;  %v865_v5 = vld [vmem:[#allocation2 + $0x18] sm:$0xff] (!%p2009_p9) }
 0x1fa   : > { %833 = vst [vmem:[#allocation2 + $0x38] sm:$0xff] %v801_v8  ;;  %849 = vst [vmem:[#allocation2 + $0xb8] sm:$0xff] %v817_v9  ;;  %v3372_v7 = vadd.f32 (!%p2009_p9), %v865_v5, %v864_v4  ;;  %v1188_v5 = vld [vmem:[#allocation11 + $0x30] sm:$0xff] (!%p2009_p9) }
 0x1fb   : > { %vm910_vm1 = vcmp.gt.f32.partialorder (!%p2009_p9), %v3367_v2, 0.0 }
 0x1fc   : > { %v735_v14 = vpop.f32.mrb[8].mxu0  ;;  %v775_v15 = vpop.f32.mrb[8].mxu1  ;;  %vm911_vm3 = vcmp.gt.f32.partialorder (!%p2009_p9), %v3372_v7, 0.0 }
 0x1fd   : > { %v802_v18 = vadd.f32 %v735_v14, %v497_v10  ;;  %v818_v19 = vadd.f32 %v775_v15, %v513_v11  ;;  %v737_v20 = vpop.f32.mrb[9].mxu0  ;;  %v777_v21 = vpop.f32.mrb[9].mxu1 }
 0x1fe   : > { %v803_v24 = vadd.f32 %v737_v20, %v498_v12  ;;  %v819_v25 = vadd.f32 %v777_v21, %v514_v13  ;;  %v739_v26 = vpop.f32.mrb[10].mxu0  ;;  %v779_v27 = vpop.f32.mrb[10].mxu1  ;;  %v866_v58 = vld [vmem:[#allocation2 + $0x20] sm:$0xff] (!%p2009_p9)  ;;  %v881_v20 = vld [vmem:[#allocation2 + $0x98] sm:$0xff] (!%p2009_p9) }
 0x1ff   : > { %834 = vst [vmem:[#allocation2 + $0x40] sm:$0xff] %v802_v18  ;;  %850 = vst [vmem:[#allocation2 + $0xc0] sm:$0xff] %v818_v19  ;;  %v804_v28 = vadd.f32 %v739_v26, %v499_v16  ;;  %v820_v29 = vadd.f32 %v779_v27, %v515_v17  ;;  %v741_v30 = vpop.f32.mrb[11].mxu0  ;;  %v781_v31 = vpop.f32.mrb[11].mxu1  ;;  %v867_v59 = vld [vmem:[#allocation2 + $0x28] sm:$0xff] (!%p2009_p9)  ;;  %v880_v19 = vld [vmem:[#allocation2 + $0x90] sm:$0xff] (!%p2009_p9) }
 0x200   : > { %835 = vst [vmem:[#allocation2 + $0x48] sm:$0xff] %v803_v24  ;;  %851 = vst [vmem:[#allocation2 + $0xc8] sm:$0xff] %v819_v25  ;;  %v805_v32 = vadd.f32 %v741_v30, %v500_v22  ;;  %v821_v33 = vadd.f32 %v781_v31, %v516_v23  ;;  %v3365_v62 = vadd.f32 (!%p2009_p9), %v867_v59, %v866_v58  ;;  %v868_v0 = vld [vmem:[#allocation2 + $0x30] sm:$0xff] (!%p2009_p9)  ;;  %v878_v21 = vld [vmem:[#allocation2 + $0x80] sm:$0xff] (!%p2009_p9) }
 0x201   : > { %836 = vst [vmem:[#allocation2 + $0x50] sm:$0xff] %v804_v28  ;;  %852 = vst [vmem:[#allocation2 + $0xd0] sm:$0xff] %v820_v29  ;;  %v869_v1 = vld [vmem:[#allocation2 + $0x38] sm:$0xff] (!%p2009_p9)  ;;  %v879_v22 = vld [vmem:[#allocation2 + $0x88] sm:$0xff] (!%p2009_p9)  ;;  %v3389_v26 = vadd.f32 (!%p2009_p9), %v881_v20, %v880_v19 }
 0x202   : > { %837 = vst [vmem:[#allocation2 + $0x58] sm:$0xff] %v805_v32  ;;  %853 = vst [vmem:[#allocation2 + $0xd8] sm:$0xff] %v821_v33  ;;  %v3369_v3 = vadd.f32 (!%p2009_p9), %v869_v1, %v868_v0  ;;  %2497 = vrcp.f32 (!%p2009_p9), %v3365_v62  ;;  %v884_v23 = vld [vmem:[#allocation2 + $0xb0] sm:$0xff] (!%p2009_p9)  ;;  %v885_v24 = vld [vmem:[#allocation2 + $0xb8] sm:$0xff] (!%p2009_p9)  ;;  %vm912_vm0 = vcmp.gt.f32.partialorder (!%p2009_p9), %v3365_v62, 0.0  ;;  %v3393_v30 = vadd.f32 (!%p2009_p9), %v879_v22, %v878_v21 }
 0x203   : > { %2499 = vrcp.f32 (!%p2009_p9), %v3367_v2  ;;  %v1166_v25 = vld [vmem:[#allocation9] sm:$0xff] (!%p2009_p9)  ;;  %v1167_v27 = vld [vmem:[#allocation9 + $0x8] sm:$0xff] (!%p2009_p9)  ;;  %v1168_v32 = vld [vmem:[#allocation9 + $0x10] sm:$0xff] (!%p2009_p9)  ;;  %vm919_vm8 = vcmp.gt.f32.partialorder (!%p2009_p9), %v3389_v26, 0.0 }
 0x204   : > { %v745_v38 = vpop.f32.mrb[12].mxu0  ;;  %v785_v39 = vpop.f32.mrb[12].mxu1  ;;  %861 = sbr.rel (%p2009_p9) target bundleno = 1110 (0x456), region = 80  ;;  %2501 = vrcp.f32 (!%p2009_p9), %v3369_v3  ;;  %v1182_v28 = vld [vmem:[#allocation11] sm:$0xff] (!%p2009_p9)  ;;  %v1183_v29 = vld [vmem:[#allocation11 + $0x8] sm:$0xff] (!%p2009_p9)  ;;  %v2231_v31 = vpack.c.bf16 (!%p2009_p9), %v1167_v27, %v1166_v25  ;;  %v1169_v33 = vld [vmem:[#allocation9 + $0x18] sm:$0xff] (!%p2009_p9) }
 0x205   : > { %v806_v42 = vadd.f32 %v745_v38, %v501_v34  ;;  %v822_v43 = vadd.f32 %v785_v39, %v517_v35  ;;  %v747_v44 = vpop.f32.mrb[13].mxu0  ;;  %v787_v45 = vpop.f32.mrb[13].mxu1  ;;  %2503 = vrcp.f32 (!%p2009_p9), %v3372_v7  ;;  %v1184_v34 = vld [vmem:[#allocation11 + $0x10] sm:$0xff] (!%p2009_p9)  ;;  %vm913_vm2 = vcmp.gt.f32.partialorder (!%p2009_p9), %v3369_v3, 0.0  ;;  %v1173_v1 = vld [vmem:[#allocation9 + $0x38] sm:$0xff] (!%p2009_p9)  ;;  %v1054_v21 = vld [vmem:[%s3319_s10] sm:$0xff] (!%p2009_p9) }
 0x206   : > { %v807_v48 = vadd.f32 %v747_v44, %v502_v36  ;;  %v823_v49 = vadd.f32 %v787_v45, %v518_v37  ;;  %v749_v50 = vpop.f32.mrb[14].mxu0  ;;  %v789_v51 = vpop.f32.mrb[14].mxu1  ;;  %v870_v9 = vld [vmem:[#allocation2 + $0x40] sm:$0xff] (!%p2009_p9)  ;;  %v883_v37 = vld [vmem:[#allocation2 + $0xa8] sm:$0xff] (!%p2009_p9)  ;;  %v2199_v38 = vpack.c.bf16 (!%p2009_p9), %v1183_v29, %v1182_v28  ;;  %v2235_v39 = vpack.c.bf16 (!%p2009_p9), %v1169_v33, %v1168_v32  ;;  %2232 = vmatprep.subr.bf16.mxu0 (!%p2009_p9), %v2231_v31  ;;  %v1172_v0 = vld [vmem:[#allocation9 + $0x30] sm:$0xff] (!%p2009_p9) }
 0x207   : > { %838 = vst [vmem:[#allocation2 + $0x60] sm:$0xff] %v806_v42  ;;  %854 = vst [vmem:[#allocation2 + $0xe0] sm:$0xff] %v822_v43  ;;  %v808_v52 = vadd.f32 %v749_v50, %v503_v40  ;;  %v824_v53 = vadd.f32 %v789_v51, %v519_v41  ;;  %v751_v54 = vpop.f32.mrb[15].mxu0  ;;  %v791_v55 = vpop.f32.mrb[15].mxu1  ;;  %v871_v10 = vld [vmem:[#allocation2 + $0x48] sm:$0xff] (!%p2009_p9)  ;;  %v882_v36 = vld [vmem:[#allocation2 + $0xa0] sm:$0xff] (!%p2009_p9)  ;;  %2234 = vmatpush3.bf16.msra.mxu0 (!%p2009_p9), %v2231_v31  ;;  %v2243_v20 = vpack.c.bf16 (!%p2009_p9), %v1173_v1, %v1172_v0 }
 0x208   : > { %839 = vst [vmem:[#allocation2 + $0x68] sm:$0xff] %v807_v48  ;;  %855 = vst [vmem:[#allocation2 + $0xe8] sm:$0xff] %v823_v49  ;;  %v809_v56 = vadd.f32 %v751_v54, %v504_v46  ;;  %v825_v57 = vadd.f32 %v791_v55, %v520_v47  ;;  %v872_v6 = vld [vmem:[#allocation2 + $0x50] sm:$0xff] (!%p2009_p9)  ;;  %v3378_v14 = vadd.f32 (!%p2009_p9), %v871_v10, %v870_v9  ;;  %v1185_v40 = vld [vmem:[#allocation11 + $0x18] sm:$0xff] (!%p2009_p9)  ;;  %2200 = vmatprep.subr.bf16.mxu1 (!%p2009_p9), %v2199_v38 }
 0x209   : > { %840 = vst [vmem:[#allocation2 + $0x70] sm:$0xff] %v808_v52  ;;  %856 = vst [vmem:[#allocation2 + $0xf0] sm:$0xff] %v824_v53  ;;  %v873_v8 = vld [vmem:[#allocation2 + $0x58] sm:$0xff] (!%p2009_p9)  ;;  %v2203_v43 = vpack.c.bf16 (!%p2009_p9), %v1185_v40, %v1184_v34  ;;  %v1170_v44 = vld [vmem:[#allocation9 + $0x20] sm:$0xff] (!%p2009_p9)  ;;  %v3402_v48 = vadd.f32 (!%p2009_p9), %v885_v24, %v884_v23  ;;  %v3407_v53 = vadd.f32 (!%p2009_p9), %v883_v37, %v882_v36  ;;  %2202 = vmatpush3.bf16.msra.mxu1 (!%p2009_p9), %v2199_v38 }
 0x20a   : > { %841 = vst [vmem:[#allocation2 + $0x78] sm:$0xff] %v809_v56  ;;  %857 = vst [vmem:[#allocation2 + $0xf8] sm:$0xff] %v825_v57  ;;  %v3375_v11 = vadd.f32 (!%p2009_p9), %v873_v8, %v872_v6  ;;  %v1171_v45 = vld [vmem:[#allocation9 + $0x28] sm:$0xff] (!%p2009_p9)  ;;  %v1186_v49 = vld [vmem:[#allocation11 + $0x20] sm:$0xff] (!%p2009_p9)  ;;  %2236 = vmatprep.subr.bf16.mxu0 (!%p2009_p9), %v2235_v39  ;;  %vm914_vm5 = vcmp.gt.f32.partialorder (!%p2009_p9), %v3378_v14, 0.0  ;;  %v1070_v27 = vunpack.c.l.bf16 (!%p2009_p9), %v1054_v21  ;;  %v1102_v28 = vrot.slane (!%p2009_p9), %v1054_v21, 4 }
 0x20b   : > { %v1187_v50 = vld [vmem:[#allocation11 + $0x28] sm:$0xff]  ;;  %v888_v54 = vld [vmem:[#allocation2 + $0xd0] sm:$0xff]  ;;  %v889_v55 = vld [vmem:[#allocation2 + $0xd8] sm:$0xff]  ;;  %v2239_v60 = vpack.c.bf16 %v1171_v45, %v1170_v44  ;;  %2204 = vmatprep.subr.bf16.mxu1 %v2203_v43  ;;  %2238 = vmatpush3.bf16.msra.mxu0 %v2235_v39  ;;  %vm918_vm9 = vcmp.gt.f32.partialorder %v3393_v30, 0.0  ;;  %vm921_vm10 = vcmp.gt.f32.partialorder %v3402_v48, 0.0  ;;  %vm920_vm11 = vcmp.gt.f32.partialorder %v3407_v53, 0.0 }
 0x20c   : > { %2505 = vrcp.f32 %v3375_v11  ;;  %v2498_v35 = vpop.eup %2497  ;;  %vm915_vm4 = vcmp.gt.f32.partialorder %v3375_v11, 0.0  ;;  %v886_v58 = vld [vmem:[#allocation2 + $0xc0] sm:$0xff]  ;;  %v887_v59 = vld [vmem:[#allocation2 + $0xc8] sm:$0xff]  ;;  %v2207_v63 = vpack.c.bf16 %v1187_v50, %v1186_v49  ;;  %v3414_v4 = vadd.f32 %v889_v55, %v888_v54  ;;  %v1189_v6 = vld [vmem:[#allocation11 + $0x38] sm:$0xff] }
 0x20d   : > { %2507 = vrcp.f32 %v3378_v14  ;;  %v2500_v41 = vpop.eup %2499  ;;  %v944_v42 = vsel %vm912_vm0, %v2498_v35, 0.0  ;;  %v3419_v9 = vadd.f32 %v887_v59, %v886_v58  ;;  %2206 = vmatpush3.bf16.msra.mxu1 %v2203_v43  ;;  %2240 = vmatprep.subr.bf16.mxu0 %v2239_v60  ;;  %v2211_v23 = vpack.c.bf16 %v1189_v6, %v1188_v5  ;;  %v1174_v24 = vld [vmem:[#allocation9 + $0x40] sm:$0xff]  ;;  %v1175_v25 = vld [vmem:[#allocation9 + $0x48] sm:$0xff]  ;;  %v1192_v44 = vld [vmem:[#allocation11 + $0x50] sm:$0xff] }
 0x20e   : > { %v874_v15 = vld [vmem:[#allocation2 + $0x60] sm:$0xff]  ;;  %v2502_v46 = vpop.eup %2501  ;;  %970 = vperm.xlu1 %2496, %v944_v42   ;;  %v942_v47 = vsel %vm910_vm1, %v2500_v41, 0.0  ;;  %2208 = vmatprep.subr.bf16.mxu1 %v2207_v63  ;;  %v1191_v32 = vld [vmem:[#allocation11 + $0x48] sm:$0xff]  ;;  %v1134_v35 = vunpack.c.l.bf16 %v1102_v28  ;;  %v2247_v38 = vpack.c.bf16 %v1175_v25, %v1174_v24  ;;  %v1176_v41 = vld [vmem:[#allocation9 + $0x50] sm:$0xff]  ;;  %vm923_vm12 = vcmp.gt.f32.partialorder %v3414_v4, 0.0 }
 0x20f   : > { %v875_v16 = vld [vmem:[#allocation2 + $0x68] sm:$0xff]  ;;  %v2504_v51 = vpop.eup %2503  ;;  %960 = vperm.xlu0 %2495, %v942_v47   ;;  %v945_v52 = vsel %vm913_vm2, %v2502_v46, 0.0  ;;  %v1190_v31 = vld [vmem:[#allocation11 + $0x40] sm:$0xff]  ;;  %2242 = vmatpush3.bf16.msra.mxu0 %v2239_v60  ;;  %v1177_v42 = vld [vmem:[#allocation9 + $0x58] sm:$0xff]  ;;  %vm922_vm13 = vcmp.gt.f32.partialorder %v3419_v9, 0.0 }
 0x210   : > { %v876_v12 = vld [vmem:[#allocation2 + $0x70] sm:$0xff]  ;;  %v3385_v18 = vadd.f32 %v875_v16, %v874_v15  ;;  %v943_v57 = vsel %vm911_vm3, %v2504_v51, 0.0  ;;  %v890_v16 = vld [vmem:[#allocation2 + $0xe0] sm:$0xff]  ;;  %v891_v19 = vld [vmem:[#allocation2 + $0xe8] sm:$0xff]  ;;  %2244 = vmatprep.subr.bf16.mxu0 %v2243_v20  ;;  %v2215_v40 = vpack.c.bf16 %v1191_v32, %v1190_v31  ;;  %v1150_v43 = vadd.f32 %v1134_v35, %v1070_v27 }
 0x211   : > { %v877_v13 = vld [vmem:[#allocation2 + $0x78] sm:$0xff]  ;;  %v892_v10 = vld [vmem:[#allocation2 + $0xf0] sm:$0xff]  ;;  %v3432_v34 = vadd.f32 %v891_v19, %v890_v16  ;;  %2210 = vmatpush3.bf16.msra.mxu1 %v2207_v63  ;;  %v2251_v50 = vpack.c.bf16 %v1177_v42, %v1176_v41  ;;  %v1178_v54 = vld [vmem:[#allocation9 + $0x60] sm:$0xff] }
 0x212   : > { %v3382_v17 = vadd.f32 %v877_v13, %v876_v12  ;;  %975 = vperm.xlu1 %2496, %v945_v52   ;;  %v893_v12 = vld [vmem:[#allocation2 + $0xf8] sm:$0xff]  ;;  %vm916_vm7 = vcmp.gt.f32.partialorder %v3385_v18, 0.0  ;;  %2212 = vmatprep.subr.bf16.mxu1 %v2211_v23  ;;  %v1179_v55 = vld [vmem:[#allocation9 + $0x68] sm:$0xff]  ;;  %v1056_v0 = vld [vmem:[%s3319_s10 + $0x10] sm:$0xff] }
 0x213   : > { %965 = vperm.xlu0 %2495, %v943_v57   ;;  %v3427_v29 = vadd.f32 %v893_v12, %v892_v10  ;;  %v1193_v45 = vld [vmem:[#allocation11 + $0x58] sm:$0xff]  ;;  %2246 = vmatpush3.bf16.msra.mxu0 %v2243_v20  ;;  %v1195_v57 = vld [vmem:[#allocation11 + $0x68] sm:$0xff]  ;;  %v2255_v63 = vpack.c.bf16 %v1179_v55, %v1178_v54  ;;  %v1180_v6 = vld [vmem:[#allocation9 + $0x70] sm:$0xff]  ;;  %v1104_v16 = vrot.slane %v1056_v0, 4  ;;  %vm924_vm15 = vcmp.gt.f32.partialorder %v3432_v34, 0.0 }
 0x214   : > { %2509 = vrcp.f32 %v3382_v17  ;;  %vm917_vm6 = vcmp.gt.f32.partialorder %v3382_v17, 0.0  ;;  %2248 = vmatprep.subr.bf16.mxu0 %v2247_v38  ;;  %v2219_v52 = vpack.c.bf16 %v1193_v45, %v1192_v44  ;;  %2175 = vmatprep.mubr.f32.mxu0 %v1150_v43  ;;  %v1055_v59 = vld [vmem:[%s3319_s10 + $0x8] sm:$0xff]  ;;  %v1196_v10 = vld [vmem:[#allocation11 + $0x70] sm:$0xff]  ;;  %v1197_v12 = vld [vmem:[#allocation11 + $0x78] sm:$0xff] }
 0x215   : > { %2511 = vrcp.f32 %v3385_v18  ;;  %2214 = vmatpush3.bf16.msra.mxu1 %v2211_v23  ;;  %v1057_v19 = vld [vmem:[%s3319_s10 + $0x18] sm:$0xff]  ;;  %vm925_vm14 = vcmp.gt.f32.partialorder %v3427_v29, 0.0  ;;  %v1058_v23 = vld [vmem:[%s3319_s10 + $0x20] sm:$0xff]  ;;  %v2227_v25 = vpack.c.bf16 %v1197_v12, %v1196_v10  ;;  %v1071_v27 = vunpack.c.l.bf16 %v1055_v59 }
 0x216   : > { %2513 = vrcp.f32 %v3389_v26  ;;  %v2506_v56 = vpop.eup %2505  ;;  %2216 = vmatprep.subr.bf16.mxu1 %v2215_v40  ;;  %v1105_v31 = vrot.slane %v1057_v19, 4  ;;  %v1136_v35 = vunpack.c.l.bf16 %v1104_v16  ;;  %v1073_v41 = vunpack.c.l.bf16 %v1057_v19 }
 0x217   : > { %2515 = vrcp.f32 %v3393_v30  ;;  %v2508_v61 = vpop.eup %2507  ;;  %v947_v8 = vsel %vm915_vm4, %v2506_v56, 0.0  ;;  %v1194_v56 = vld [vmem:[#allocation11 + $0x60] sm:$0xff]  ;;  %2250 = vmatpush3.bf16.msra.mxu0 %v2247_v38  ;;  %v1074_v45 = vunpack.c.l.bf16 %v1058_v23 }
 0x218   : > { %2517 = vrcp.f32 %v3402_v48  ;;  %v946_v15 = vsel %vm914_vm5, %v2508_v61, 0.0  ;;  %985 = vperm.xlu1 %2496, %v947_v8   ;;  %2252 = vmatprep.subr.bf16.mxu0 %v2251_v50  ;;  %v2223_v5 = vpack.c.bf16 %v1195_v57, %v1194_v56  ;;  %v1181_v8 = vld [vmem:[#allocation9 + $0x78] sm:$0xff]  ;;  %v1137_v42 = vunpack.c.l.bf16 %v1105_v31 }
 0x219   : > { %2519 = vrcp.f32 %v3407_v53  ;;  %980 = vperm.xlu0 %2495, %v946_v15   ;;  %2218 = vmatpush3.bf16.msra.mxu1 %v2215_v40 }
 0x21a   : > { %2521 = vrcp.f32 %v3414_v4  ;;  %2220 = vmatprep.subr.bf16.mxu1 %v2219_v52 }
 0x21b   : > { %2523 = vrcp.f32 %v3419_v9  ;;  %2254 = vmatpush3.bf16.msra.mxu0 %v2251_v50  ;;  %v1062_v50 = vld [vmem:[%s3319_s10 + $0x40] sm:$0xff] }
 0x21c   : > { %2525 = vrcp.f32 %v3427_v29  ;;  %2256 = vmatprep.subr.bf16.mxu0 %v2255_v63 }
 0x21d   : > { %2527 = vrcp.f32 %v3432_v34  ;;  %2222 = vmatpush3.bf16.msra.mxu1 %v2219_v52 }
 0x21e   : > { %v2510_v13 = vpop.eup %2509  ;;  %2224 = vmatprep.subr.bf16.mxu1 %v2223_v5 }
 0x21f   : > { %v2512_v22 = vpop.eup %2511  ;;  %v949_v33 = vsel %vm917_vm6, %v2510_v13, 0.0  ;;  %v1103_v13 = vrot.slane %v1055_v59, 4  ;;  %2258 = vmatpush3.bf16.msra.mxu0 %v2255_v63  ;;  %v1110_v59 = vrot.slane %v1062_v50, 4 }
 0x220   : > { %v2514_v36 = vpop.eup %2513  ;;  %v948_v37 = vsel %vm916_vm7, %v2512_v22, 0.0  ;;  %995 = vperm.xlu1 %2496, %v949_v33   ;;  %v2259_v22 = vpack.c.bf16 %v1181_v8, %v1180_v6  ;;  %v1072_v33 = vunpack.c.l.bf16 %v1056_v0  ;;  %v1078_v8 = vunpack.c.l.bf16 %v1062_v50 }
 0x221   : > { %v2516_v39 = vpop.eup %2515  ;;  %990 = vperm.xlu0 %2495, %v948_v37   ;;  %v951_v46 = vsel %vm919_vm8, %v2514_v36, 0.0  ;;  %v1135_v28 = vunpack.c.l.bf16 %v1103_v13  ;;  %v1106_v36 = vrot.slane %v1058_v23, 4  ;;  %v1059_v37 = vld [vmem:[%s3319_s10 + $0x28] sm:$0xff]  ;;  %2226 = vmatpush3.bf16.msra.mxu1 %v2223_v5  ;;  %v1142_v10 = vunpack.c.l.bf16 %v1110_v59  ;;  %v1065_v13 = vld [vmem:[%s3319_s10 + $0x58] sm:$0xff] }
 0x222   : > { %v2518_v47 = vpop.eup %2517  ;;  %v950_v49 = vsel %vm918_vm9, %v2516_v39, 0.0  ;;  %2260 = vmatprep.subr.bf16.mxu0 %v2259_v22  ;;  %v1060_v39 = vld [vmem:[%s3319_s10 + $0x30] sm:$0xff]  ;;  %2228 = vmatprep.subr.bf16.mxu1 %v2227_v25  ;;  %v1107_v43 = vrot.slane %v1059_v37, 4  ;;  %v1152_v44 = vadd.f32 %v1136_v35, %v1072_v33  ;;  %v1075_v52 = vunpack.c.l.bf16 %v1059_v37 }
 0x223   : > { %v2520_v51 = vpop.eup %2519  ;;  %v953_v58 = vsel %vm921_vm10, %v2518_v47, 0.0  ;;  %v1151_v40 = vadd.f32 %v1135_v28, %v1071_v27  ;;  %2262 = vmatpush3.bf16.msra.mxu0 %v2259_v22  ;;  %v1108_v47 = vrot.slane %v1060_v39, 4  ;;  %v1076_v57 = vunpack.c.l.bf16 %v1060_v39  ;;  %v1067_v27 = vld [vmem:[%s3319_s10 + $0x68] sm:$0xff]  ;;  %v1068_v28 = vld [vmem:[%s3319_s10 + $0x70] sm:$0xff] }
 0x224   : > { %1005 = vperm.xlu1 %2496, %v951_v46   ;;  %v2522_v60 = vpop.eup %2521  ;;  %v952_v61 = vsel %vm920_vm11, %v2520_v51, 0.0  ;;  %v1138_v46 = vunpack.c.l.bf16 %v1106_v36  ;;  %v1153_v51 = vadd.f32 %v1137_v42, %v1073_v41  ;;  %v1139_v54 = vunpack.c.l.bf16 %v1107_v43 }
 0x225   : > { %1000 = vperm.xlu0 %2495, %v950_v49   ;;  %v2524_v1 = vpop.eup %2523  ;;  %v955_v15 = vsel %vm923_vm12, %v2522_v60, 0.0  ;;  %v1061_v49 = vld [vmem:[%s3319_s10 + $0x38] sm:$0xff]  ;;  %2230 = vmatpush3.bf16.msra.mxu1 %v2227_v25  ;;  %v1063_v60 = vld [vmem:[%s3319_s10 + $0x48] sm:$0xff]  ;;  %v1158_v22 = vadd.f32 %v1142_v10, %v1078_v8  ;;  %v1115_v35 = vrot.slane %v1067_v27, 4  ;;  %v1116_v39 = vrot.slane %v1068_v28, 4 }
 0x226   : > { %v2526_v20 = vpop.eup %2525  ;;  %v954_v21 = vsel %vm922_vm13, %v2524_v1, 0.0  ;;  %2176 = vmatmul.mubr.f32.vlgmr.msra.gmra.mrb[0].mxu0 %v1151_v40  ;;  %v1109_v55 = vrot.slane %v1061_v49, 4  ;;  %v1154_v56 = vadd.f32 %v1138_v46, %v1074_v45  ;;  %v1155_v63 = vadd.f32 %v1139_v54, %v1075_v52  ;;  %v1069_v40 = vld [vmem:[%s3319_s10 + $0x78] sm:$0xff] }
 0x227   : > { %v2528_v24 = vpop.eup %2527  ;;  %v957_v32 = vsel %vm925_vm14, %v2526_v20, 0.0  ;;  %2178 = vmatprep.mubr.f32.mxu0 %v1152_v44  ;;  %v1077_v0 = vunpack.c.l.bf16 %v1061_v49  ;;  %v1111_v5 = vrot.slane %v1063_v60, 4  ;;  %v1079_v19 = vunpack.c.l.bf16 %v1063_v60 }
 0x228   : > { %1015 = vperm.xlu1 %2496, %v953_v58   ;;  %v956_v38 = vsel %vm924_vm15, %v2528_v24, 0.0  ;;  %v1140_v58 = vunpack.c.l.bf16 %v1108_v47  ;;  %v1141_v1 = vunpack.c.l.bf16 %v1109_v55  ;;  %v1083_v42 = vunpack.c.l.bf16 %v1067_v27 }
 0x229   : > { %1010 = vperm.xlu0 %2495, %v952_v61   ;;  %v1064_v61 = vld [vmem:[%s3319_s10 + $0x50] sm:$0xff]  ;;  %v1143_v20 = vunpack.c.l.bf16 %v1111_v5  ;;  %v1147_v43 = vunpack.c.l.bf16 %v1115_v35  ;;  %v1117_v44 = vrot.slane %v1069_v40, 4  ;;  %v1084_v46 = vunpack.c.l.bf16 %v1068_v28 }
 0x22a   : > { %2179 = vmatmul.mubr.f32.gmra.mrb[2].mxu0 %v1153_v51  ;;  %v1156_v6 = vadd.f32 %v1140_v58, %v1076_v57  ;;  %v1112_v12 = vrot.slane %v1064_v61, 4  ;;  %v1157_v16 = vadd.f32 %v1141_v1, %v1077_v0  ;;  %v1080_v23 = vunpack.c.l.bf16 %v1064_v61 }
 0x22b   : > { %2181 = vmatprep.mubr.f32.mxu0 %v1154_v56  ;;  %v1159_v31 = vadd.f32 %v1143_v20, %v1079_v19  ;;  %v1148_v47 = vunpack.c.l.bf16 %v1116_v39  ;;  %v1163_v49 = vadd.f32 %v1147_v43, %v1083_v42  ;;  %v1085_v50 = vunpack.c.l.bf16 %v1069_v40 }
 0x22c   : > { %1025 = vperm.xlu1 %2496, %v955_v15   ;;  %v1066_v15 = vld [vmem:[%s3319_s10 + $0x60] sm:$0xff]  ;;  %v1144_v24 = vunpack.c.l.bf16 %v1112_v12  ;;  %v1149_v51 = vunpack.c.l.bf16 %v1117_v44 }
 0x22d   : > { %1020 = vperm.xlu0 %2495, %v954_v21   ;;  %v1113_v21 = vrot.slane %v1065_v13, 4  ;;  %v1114_v25 = vrot.slane %v1066_v15, 4  ;;  %v1082_v37 = vunpack.c.l.bf16 %v1066_v15  ;;  %v1164_v52 = vadd.f32 %v1148_v47, %v1084_v46 }
 0x22e   : > { %2182 = vmatmul.mubr.f32.gmra.mrb[4].mxu0 %v1155_v63  ;;  %v1160_v36 = vadd.f32 %v1144_v24, %v1080_v23  ;;  %v1165_v54 = vadd.f32 %v1149_v51, %v1085_v50 }
 0x22f   : > { %2184 = vmatprep.mubr.f32.mxu0 %v1156_v6  ;;  %v1145_v33 = vunpack.c.l.bf16 %v1113_v21 }
 0x230   : > { %1035 = vperm.xlu1 %2496, %v957_v32   ;;  %v1081_v32 = vunpack.c.l.bf16 %v1065_v13 }
 0x231   : > { %1030 = vperm.xlu0 %2495, %v956_v38   ;;  %v1146_v38 = vunpack.c.l.bf16 %v1114_v25 }
 0x232   : > { %2185 = vmatmul.mubr.f32.gmra.mrb[6].mxu0 %v1157_v16  ;;  %v1161_v41 = vadd.f32 %v1145_v33, %v1081_v32 }
 0x233   : > { %2187 = vmatprep.mubr.f32.mxu0 %v1158_v22  ;;  %v1162_v45 = vadd.f32 %v1146_v38, %v1082_v37 }
 0x236   : > { %2188 = vmatmul.mubr.f32.gmra.mrb[8].mxu0 %v1159_v31 }
 0x237   : > { %2190 = vmatprep.mubr.f32.mxu0 %v1160_v36 }
 0x23a   : > { %2191 = vmatmul.mubr.f32.gmra.mrb[10].mxu0 %v1161_v41 }
 0x23b   : > { %2193 = vmatprep.mubr.f32.mxu0 %v1162_v45 }
 0x23e   : > { %2194 = vmatmul.mubr.f32.gmra.mrb[12].mxu0 %v1163_v49 }
 0x23f   : > { %2196 = vmatprep.mubr.f32.mxu0 %v1164_v52 }
 0x242   : > { %2197 = vmatmul.mubr.f32.gmra.mrb[14].mxu0 %v1165_v54 }
 0x28d   : > { %v971_v55 = vpop.permute.xlu1 %970 }
 0x28e   : > { %v961_v56 = vpop.permute.xlu0 %960  ;;  %v1040_v59 = vmul.f32 %v971_v55, %v3365_v62 }
 0x28f   : > { %v1038_v57 = vmul.f32 %v961_v56, %v3367_v2 }
 0x291   : > { %2119 = vmatprep.mubr.f32.mxu1 %v1038_v57  ;;  %v976_v58 = vpop.permute.xlu1 %975 }
 0x292   : > { %v966_v60 = vpop.permute.xlu0 %965  ;;  %v1041_v63 = vmul.f32 %v976_v58, %v3369_v3 }
 0x293   : > { %v1039_v61 = vmul.f32 %v966_v60, %v3372_v7 }
 0x295   : > { %2120 = vmatmul.mubr.f32.vlgmr.msra.gmra.mrb[0].mxu1 %v1039_v61 }
 0x296   : > { %2122 = vmatprep.mubr.f32.mxu1 %v1040_v59 }
 0x297   : > { %v986_v0 = vpop.permute.xlu1 %985 }
 0x298   : > { %v981_v1 = vpop.permute.xlu0 %980  ;;  %v1043_v2 = vmul.f32 %v986_v0, %v3375_v11 }
 0x299   : > { %v1042_v5 = vmul.f32 %v981_v1, %v3378_v14  ;;  %2123 = vmatmul.mubr.f32.gmra.mrb[2].mxu1 %v1041_v63 }
 0x29b   : > { %2125 = vmatprep.mubr.f32.mxu1 %v1042_v5 }
 0x29d   : > { %2126 = vmatmul.mubr.f32.gmra.mrb[4].mxu1 %v1043_v2 }
 0x29f   : > { %v996_v6 = vpop.permute.xlu1 %995 }
 0x2a0   : > { %v991_v8 = vpop.permute.xlu0 %990  ;;  %v1045_v3 = vmul.f32 %v996_v6, %v3382_v17 }
 0x2a1   : > { %v1044_v10 = vmul.f32 %v991_v8, %v3385_v18 }
 0x2a3   : > { %v1006_v62 = vpop.permute.xlu1 %1005  ;;  %2128 = vmatprep.mubr.f32.mxu1 %v1044_v10 }
 0x2a4   : > { %v1001_v7 = vpop.permute.xlu0 %1000  ;;  %2129 = vmatmul.mubr.f32.gmra.mrb[6].mxu1 %v1045_v3  ;;  %v1047_v15 = vmul.f32 %v1006_v62, %v3389_v26 }
 0x2a5   : > { %v1046_v12 = vmul.f32 %v1001_v7, %v3393_v30 }
 0x2a7   : > { %v1016_v13 = vpop.permute.xlu1 %1015  ;;  %2131 = vmatprep.mubr.f32.mxu1 %v1046_v12 }
 0x2a8   : > { %v1011_v14 = vpop.permute.xlu0 %1010  ;;  %2132 = vmatmul.mubr.f32.gmra.mrb[8].mxu1 %v1047_v15  ;;  %v1049_v19 = vmul.f32 %v1016_v13, %v3402_v48 }
 0x2a9   : > { %v1048_v16 = vmul.f32 %v1011_v14, %v3407_v53 }
 0x2ab   : > { %v1026_v11 = vpop.permute.xlu1 %1025  ;;  %2134 = vmatprep.mubr.f32.mxu1 %v1048_v16 }
 0x2ac   : > { %v1021_v18 = vpop.permute.xlu0 %1020  ;;  %2135 = vmatmul.mubr.f32.gmra.mrb[10].mxu1 %v1049_v19  ;;  %v1051_v30 = vmul.f32 %v1026_v11, %v3414_v4 }
 0x2ad   : > { %v1050_v20 = vmul.f32 %v1021_v18, %v3419_v9 }
 0x2af   : > { %2137 = vmatprep.mubr.f32.mxu1 %v1050_v20  ;;  %v1036_v22 = vpop.permute.xlu1 %1035 }
 0x2b0   : > { %v1031_v17 = vpop.permute.xlu0 %1030  ;;  %2138 = vmatmul.mubr.f32.gmra.mrb[12].mxu1 %v1051_v30  ;;  %v1053_v26 = vmul.f32 %v1036_v22, %v3427_v29  ;;  %v3484_v29 = vld [vmem:[%s3880_s21] ss:$0 sm:$0xff] }
 0x2b1   : > { %v1052_v21 = vmul.f32 %v1031_v17, %v3432_v34 }
 0x2b3   : > { %2140 = vmatprep.mubr.f32.mxu1 %v1052_v21 }
 0x2b4   : > { %2141 = vmatmul.mubr.f32.gmra.mrb[14].mxu1 %v1053_v26 }
 0x2f9   : > { %v2177_v53 = vpop.f32.mrb[0].mxu0 }
 0x2fa   : > { %v1409_v23 = vpop.f32.mrb[1].mxu0 }
 0x2fd   : > { %v2180_v24 = vpop.f32.mrb[2].mxu0 }
 0x2fe   : > { %v1419_v25 = vpop.f32.mrb[3].mxu0 }
 0x301   : > { %v2183_v48 = vpop.f32.mrb[4].mxu0 }
 0x302   : > { %v1429_v27 = vpop.f32.mrb[5].mxu0 }
 0x305   : > { %v2186_v9 = vpop.f32.mrb[6].mxu0 }
 0x306   : > { %v1439_v28 = vpop.f32.mrb[7].mxu0 }
 0x309   : > { %v2189_v31 = vpop.f32.mrb[8].mxu0 }
 0x30a   : > { %v1449_v32 = vpop.f32.mrb[9].mxu0 }
 0x30d   : > { %v2192_v33 = vpop.f32.mrb[10].mxu0 }
 0x30e   : > { %v1459_v4 = vpop.f32.mrb[11].mxu0 }
 0x311   : > { %v2195_v35 = vpop.f32.mrb[12].mxu0 }
 0x312   : > { %v1469_v34 = vpop.f32.mrb[13].mxu0 }
 0x315   : > { %v2198_v36 = vpop.f32.mrb[14].mxu0 }
 0x316   : > { %v1479_v37 = vpop.f32.mrb[15].mxu0 }
 0x368   : > { %v2121_v38 = vpop.f32.mrb[0].mxu1 }
 0x369   : > { %v1415_v39 = vadd.f32 %v2177_v53, %v2121_v38  ;;  %v1264_v40 = vpop.f32.mrb[1].mxu1 }
 0x36a   : > { %v1410_v41 = vadd.f32 %v1409_v23, %v1264_v40 }
 0x36b   : > { %v3487_v42 = vadd.f32 %v3484_v29, %v1415_v39 }
 0x36c   : > { %v3490_v43 = vadd.f32 %v3484_v29, %v1410_v41  ;;  %v2124_v44 = vpop.f32.mrb[2].mxu1 }
 0x36d   : > { %v1425_v45 = vadd.f32 %v2180_v24, %v2124_v44  ;;  %1513 = vadd.xlane.f32.xlu1 %v3487_v42  ;;  %v1274_v46 = vpop.f32.mrb[3].mxu1  ;;  %v1544_v52 = vmul.f32 %v3487_v42, %v3487_v42 }
 0x36e   : > { %v1420_v47 = vadd.f32 %v1419_v25, %v1274_v46  ;;  %1511 = vadd.xlane.f32.xlu0 %v3490_v43  ;;  %v1543_v49 = vmul.f32 %v3490_v43, %v3490_v43 }
 0x36f   : > { %v3504_v58 = vadd.f32 %v3484_v29, %v1425_v45 }
 0x370   : > { %v3497_v50 = vadd.f32 %v3484_v29, %v1420_v47  ;;  %v2127_v51 = vpop.f32.mrb[4].mxu1 }
 0x371   : > { %v1435_v54 = vadd.f32 %v2183_v48, %v2127_v51  ;;  %1559 = vadd.xlane.f32.xlu1 %v1543_v49  ;;  %v1284_v55 = vpop.f32.mrb[5].mxu1  ;;  %v1546_v62 = vmul.f32 %v3504_v58, %v3504_v58 }
 0x372   : > { %v1430_v56 = vadd.f32 %v1429_v27, %v1284_v55  ;;  %1561 = vadd.xlane.f32.xlu0 %v1544_v52  ;;  %v1545_v57 = vmul.f32 %v3497_v50, %v3497_v50 }
 0x373   : > { %v3520_v14 = vadd.f32 %v3484_v29, %v1435_v54 }
 0x374   : > { %v3508_v0 = vadd.f32 %v3484_v29, %v1430_v56 }
 0x375   : > { %1563 = vadd.xlane.f32.xlu1 %v1545_v57  ;;  %v1548_v17 = vmul.f32 %v3520_v14, %v3520_v14 }
 0x376   : > { %1517 = vadd.xlane.f32.xlu0 %v3504_v58  ;;  %v1547_v2 = vmul.f32 %v3508_v0, %v3508_v0 }
 0x377   : > { %v2130_v59 = vpop.f32.mrb[6].mxu1 }
 0x378   : > { %v1445_v60 = vadd.f32 %v2186_v9, %v2130_v59  ;;  %v1294_v61 = vpop.f32.mrb[7].mxu1 }
 0x379   : > { %v1440_v63 = vadd.f32 %v1439_v28, %v1294_v61  ;;  %1519 = vadd.xlane.f32.xlu1 %v3508_v0 }
 0x37a   : > { %1515 = vadd.xlane.f32.xlu0 %v3497_v50  ;;  %v3532_v53 = vadd.f32 %v3484_v29, %v1445_v60 }
 0x37b   : > { %v2133_v1 = vpop.f32.mrb[8].mxu1  ;;  %v3517_v13 = vadd.f32 %v3484_v29, %v1440_v63 }
 0x37c   : > { %v1455_v5 = vadd.f32 %v2189_v31, %v2133_v1  ;;  %v1304_v6 = vpop.f32.mrb[9].mxu1  ;;  %v1550_v24 = vmul.f32 %v3532_v53, %v3532_v53 }
 0x37d   : > { %v1450_v8 = vadd.f32 %v1449_v32, %v1304_v6  ;;  %1567 = vadd.xlane.f32.xlu1 %v1547_v2  ;;  %v1549_v19 = vmul.f32 %v3517_v13, %v3517_v13 }
 0x37e   : > { %1565 = vadd.xlane.f32.xlu0 %v1546_v62  ;;  %v3544_v48 = vadd.f32 %v3484_v29, %v1455_v5 }
 0x37f   : > { %v2136_v10 = vpop.f32.mrb[10].mxu1  ;;  %v3529_v26 = vadd.f32 %v3484_v29, %v1450_v8 }
 0x380   : > { %v1465_v7 = vadd.f32 %v2192_v33, %v2136_v10  ;;  %v1314_v3 = vpop.f32.mrb[11].mxu1  ;;  %v1552_v9 = vmul.f32 %v3544_v48, %v3544_v48 }
 0x381   : > { %v1460_v12 = vadd.f32 %v1459_v4, %v1314_v3  ;;  %1523 = vadd.xlane.f32.xlu1 %v3517_v13  ;;  %v1551_v23 = vmul.f32 %v3529_v26, %v3529_v26 }
 0x382   : > { %1521 = vadd.xlane.f32.xlu0 %v3520_v14  ;;  %v3556_v31 = vadd.f32 %v3484_v29, %v1465_v7 }
 0x383   : > { %v2139_v15 = vpop.f32.mrb[12].mxu1  ;;  %v3541_v25 = vadd.f32 %v3484_v29, %v1460_v12 }
 0x384   : > { %v1475_v16 = vadd.f32 %v2195_v35, %v2139_v15  ;;  %v1324_v11 = vpop.f32.mrb[13].mxu1  ;;  %v1554_v33 = vmul.f32 %v3556_v31, %v3556_v31 }
 0x385   : > { %v1470_v18 = vadd.f32 %v1469_v34, %v1324_v11  ;;  %1571 = vadd.xlane.f32.xlu1 %v1549_v19  ;;  %v1553_v27 = vmul.f32 %v3541_v25, %v3541_v25 }
 0x386   : > { %1569 = vadd.xlane.f32.xlu0 %v1548_v17  ;;  %v3568_v35 = vadd.f32 %v3484_v29, %v1475_v16 }
 0x387   : > { %v2142_v20 = vpop.f32.mrb[14].mxu1  ;;  %v3553_v28 = vadd.f32 %v3484_v29, %v1470_v18 }
 0x388   : > { %v1485_v30 = vadd.f32 %v2198_v36, %v2142_v20  ;;  %v1334_v21 = vpop.f32.mrb[15].mxu1  ;;  %v1556_v36 = vmul.f32 %v3568_v35, %v3568_v35 }
 0x389   : > { %v1480_v22 = vadd.f32 %v1479_v37, %v1334_v21  ;;  %1527 = vadd.xlane.f32.xlu1 %v3529_v26  ;;  %v1555_v32 = vmul.f32 %v3553_v28, %v3553_v28  ;;  %v3595_v21 = vld [vmem:[%s3881_s11] ss:$0 sm:$0xff] }
 0x38a   : > { %1525 = vadd.xlane.f32.xlu0 %v3532_v53  ;;  %v3577_v37 = vadd.f32 %v3484_v29, %v1485_v30 }
 0x38b   : > { %v3565_v4 = vadd.f32 %v3484_v29, %v1480_v22 }
 0x38c   : > { %v1558_v38 = vmul.f32 %v3577_v37, %v3577_v37 }
 0x38d   : > { %1575 = vadd.xlane.f32.xlu1 %v1551_v23  ;;  %v1557_v34 = vmul.f32 %v3565_v4, %v3565_v4 }
 0x38e   : > { %1573 = vadd.xlane.f32.xlu0 %v1550_v24 }
 0x391   : > { %1531 = vadd.xlane.f32.xlu1 %v3541_v25 }
 0x392   : > { %1529 = vadd.xlane.f32.xlu0 %v3544_v48 }
 0x395   : > { %1579 = vadd.xlane.f32.xlu1 %v1553_v27 }
 0x396   : > { %1577 = vadd.xlane.f32.xlu0 %v1552_v9 }
 0x399   : > { %1535 = vadd.xlane.f32.xlu1 %v3553_v28 }
 0x39a   : > { %1533 = vadd.xlane.f32.xlu0 %v3556_v31 }
 0x39d   : > { %1583 = vadd.xlane.f32.xlu1 %v1555_v32 }
 0x39e   : > { %1581 = vadd.xlane.f32.xlu0 %v1554_v33  ;;  %v3604_v33 = vld [vmem:[%s3882_s8] ss:$0 sm:$0xff] }
 0x3a1   : > { %1539 = vadd.xlane.f32.xlu1 %v3565_v4 }
 0x3a2   : > { %1537 = vadd.xlane.f32.xlu0 %v3568_v35 }
 0x3a5   : > { %1587 = vadd.xlane.f32.xlu1 %v1557_v34 }
 0x3a6   : > { %1585 = vadd.xlane.f32.xlu0 %v1556_v36 }
 0x3aa   : > { %1541 = vadd.xlane.f32.xlu0 %v3577_v37 }
 0x3ae   : > { %1589 = vadd.xlane.f32.xlu0 %v1558_v38 }
 0x3fa   : > { %v1514_v39 = vpop.xlane.xlu1 %1513 }
 0x3fb   : > { %v1512_v40 = vpop.xlane.xlu0 %1511  ;;  %v1592_v41 = vmul.f32 0.03125, %v1514_v39 }
 0x3fc   : > { %v1591_v44 = vmul.f32 0.03125, %v1512_v40 }
 0x3fd   : > { %v1624_v51 = vmul.f32 %v1592_v41, %v1592_v41  ;;  %v1656_v30 = vsub.f32 %v3487_v42, %v1592_v41 }
 0x3fe   : > { %v1623_v45 = vmul.f32 %v1591_v44, %v1591_v44  ;;  %v1560_v46 = vpop.xlane.xlu1 %1559  ;;  %v1655_v11 = vsub.f32 %v3490_v43, %v1591_v44 }
 0x3ff   : > { %v1607_v47 = vmul.f32 0.03125, %v1560_v46  ;;  %v1562_v49 = vpop.xlane.xlu0 %1561 }
 0x400   : > { %v1608_v52 = vmul.f32 0.03125, %v1562_v49 }
 0x401   : > { %v1639_v54 = vsub.f32 %v1607_v47, %v1623_v45 }
 0x402   : > { %v1640_v55 = vsub.f32 %v1608_v52, %v1624_v51  ;;  %v1564_v29 = vpop.xlane.xlu1 %1563 }
 0x403   : > { %v1671_v56 = vadd.f32 1e-05, %v1639_v54  ;;  %v1518_v57 = vpop.xlane.xlu0 %1517  ;;  %v1609_v6 = vmul.f32 0.03125, %v1564_v29 }
 0x404   : > { %v1672_v59 = vadd.f32 1e-05, %v1640_v55  ;;  %v3584_v1 = vmul.f32 0.03125, %v1518_v57 }
 0x405   : > { %2529 = vrsqrt.f32 %v1671_v56 }
 0x406   : > { %2531 = vrsqrt.f32 %v1672_v59  ;;  %v1520_v60 = vpop.xlane.xlu1 %1519  ;;  %v1626_v3 = vmul.f32 %v3584_v1, %v3584_v1 }
 0x407   : > { %v3582_v61 = vmul.f32 0.03125, %v1520_v60  ;;  %v1516_v63 = vpop.xlane.xlu0 %1515 }
 0x408   : > { %v1593_v5 = vmul.f32 0.03125, %v1516_v63 }
 0x409   : > { %v1627_v10 = vmul.f32 %v3582_v61, %v3582_v61 }
 0x40a   : > { %v1625_v8 = vmul.f32 %v1593_v5, %v1593_v5  ;;  %v1568_v2 = vpop.xlane.xlu1 %1567  ;;  %v1657_v63 = vsub.f32 %v3497_v50, %v1593_v5 }
 0x40b   : > { %v1611_v62 = vmul.f32 0.03125, %v1568_v2  ;;  %v1566_v7 = vpop.xlane.xlu0 %1565 }
 0x40c   : > { %v1641_v12 = vsub.f32 %v1609_v6, %v1625_v8  ;;  %v1610_v15 = vmul.f32 0.03125, %v1566_v7  ;;  %v1659_v8 = vsub.f32 %v3508_v0, %v3582_v61 }
 0x40d   : > { %v1643_v16 = vsub.f32 %v1611_v62, %v1627_v10  ;;  %v1658_v62 = vsub.f32 %v3504_v58, %v3584_v1 }
 0x40e   : > { %v1673_v18 = vadd.f32 1e-05, %v1641_v12  ;;  %v1642_v19 = vsub.f32 %v1610_v15, %v1626_v3  ;;  %v1524_v20 = vpop.xlane.xlu1 %1523 }
 0x40f   : > { %v2530_v17 = vpop.eup %2529  ;;  %v1675_v22 = vadd.f32 1e-05, %v1643_v16  ;;  %v3597_v23 = vmul.f32 0.03125, %v1524_v20  ;;  %v1522_v24 = vpop.xlane.xlu0 %1521 }
 0x410   : > { %v2532_v27 = vpop.eup %2531  ;;  %v1703_v9 = vmul.f32 %v2530_v17, %v1655_v11  ;;  %2533 = vrsqrt.f32 %v1673_v18  ;;  %v1674_v32 = vadd.f32 1e-05, %v1642_v19  ;;  %v3599_v43 = vmul.f32 0.03125, %v1522_v24 }
 0x411   : > { %v1704_v42 = vmul.f32 %v2532_v27, %v1656_v30  ;;  %2535 = vrsqrt.f32 %v1675_v22  ;;  %v1629_v39 = vmul.f32 %v3597_v23, %v3597_v23 }
 0x412   : > { %v1726_v34 = vmul.f32 %v3595_v21, %v1703_v9  ;;  %2537 = vrsqrt.f32 %v1674_v32  ;;  %v1572_v36 = vpop.xlane.xlu1 %1571  ;;  %v1628_v45 = vmul.f32 %v3599_v43, %v3599_v43 }
 0x413   : > { %v1727_v38 = vmul.f32 %v3595_v21, %v1704_v42  ;;  %v1613_v40 = vmul.f32 0.03125, %v1572_v36  ;;  %v1570_v41 = vpop.xlane.xlu0 %1569 }
 0x414   : > { %v1749_v44 = vadd.f32 %v3604_v33, %v1726_v34  ;;  %v1612_v46 = vmul.f32 0.03125, %v1570_v41 }
 0x415   : > { %v1750_v47 = vadd.f32 %v3604_v33, %v1727_v38  ;;  %v1645_v49 = vsub.f32 %v1613_v40, %v1629_v39  ;;  %v1661_v38 = vsub.f32 %v3517_v13, %v3597_v23 }
 0x416   : > { %v1765_v51 = vmax.f32 %v1749_v44, 0.0  ;;  %v1644_v52 = vsub.f32 %v1612_v46, %v1628_v45  ;;  %v1528_v54 = vpop.xlane.xlu1 %1527  ;;  %v1660_v44 = vsub.f32 %v3520_v14, %v3599_v43 }
 0x417   : > { %v1766_v55 = vmax.f32 %v1750_v47, 0.0  ;;  %v1677_v29 = vadd.f32 1e-05, %v1645_v49  ;;  %v3614_v56 = vmul.f32 0.03125, %v1528_v54  ;;  %v1526_v57 = vpop.xlane.xlu0 %1525 }
 0x418   : > { %1781 = vst [vmem:[%s3329_s9] sm:$0xff] %v1765_v51  ;;  %v1676_v59 = vadd.f32 1e-05, %v1644_v52  ;;  %v3617_v60 = vmul.f32 0.03125, %v1526_v57 }
 0x419   : > { %1782 = vst [vmem:[%s3329_s9 + $0x8] sm:$0xff] %v1766_v55  ;;  %2539 = vrsqrt.f32 %v1677_v29  ;;  %v1631_v3 = vmul.f32 %v3614_v56, %v3614_v56 }
 0x41a   : > { %v2534_v6 = vpop.eup %2533  ;;  %2541 = vrsqrt.f32 %v1676_v59  ;;  %v1576_v2 = vpop.xlane.xlu1 %1575  ;;  %v1630_v50 = vmul.f32 %v3617_v60, %v3617_v60 }
 0x41b   : > { %v2536_v10 = vpop.eup %2535  ;;  %v1705_v7 = vmul.f32 %v2534_v6, %v1657_v63  ;;  %v1615_v12 = vmul.f32 0.03125, %v1576_v2  ;;  %v1574_v15 = vpop.xlane.xlu0 %1573 }
 0x41c   : > { %v2538_v16 = vpop.eup %2537  ;;  %v1707_v11 = vmul.f32 %v2536_v10, %v1659_v8  ;;  %v1614_v5 = vmul.f32 0.03125, %v1574_v15 }
 0x41d   : > { %v1728_v0 = vmul.f32 %v3595_v21, %v1705_v7  ;;  %v1706_v61 = vmul.f32 %v2538_v16, %v1658_v62  ;;  %v1647_v18 = vsub.f32 %v1615_v12, %v1631_v3  ;;  %v1663_v7 = vsub.f32 %v3529_v26, %v3614_v56 }
 0x41e   : > { %v1730_v19 = vmul.f32 %v3595_v21, %v1707_v11  ;;  %v1646_v20 = vsub.f32 %v1614_v5, %v1630_v50  ;;  %v1532_v58 = vpop.xlane.xlu1 %1531  ;;  %v1662_v16 = vsub.f32 %v3532_v53, %v3617_v60 }
 0x41f   : > { %v1751_v1 = vadd.f32 %v3604_v33, %v1728_v0  ;;  %v1729_v17 = vmul.f32 %v3595_v21, %v1706_v61  ;;  %v1679_v30 = vadd.f32 1e-05, %v1647_v18  ;;  %v3633_v22 = vmul.f32 0.03125, %v1532_v58  ;;  %v1530_v24 = vpop.xlane.xlu0 %1529 }
 0x420   : > { %v1753_v27 = vadd.f32 %v3604_v33, %v1730_v19  ;;  %v1678_v9 = vadd.f32 1e-05, %v1646_v20  ;;  %v3636_v32 = vmul.f32 0.03125, %v1530_v24 }
 0x421   : > { %v1767_v42 = vmax.f32 %v1751_v1, 0.0  ;;  %v1752_v34 = vadd.f32 %v3604_v33, %v1729_v17  ;;  %2543 = vrsqrt.f32 %v1679_v30  ;;  %v1633_v45 = vmul.f32 %v3633_v22, %v3633_v22 }
 0x422   : > { %v1769_v36 = vmax.f32 %v1753_v27, 0.0  ;;  %2545 = vrsqrt.f32 %v1678_v9  ;;  %v1580_v39 = vpop.xlane.xlu1 %1579  ;;  %v1632_v52 = vmul.f32 %v3636_v32, %v3636_v32 }
 0x423   : > { %v2540_v40 = vpop.eup %2539  ;;  %1783 = vst [vmem:[%s3329_s9 + $0x10] sm:$0xff] %v1767_v42  ;;  %v1768_v41 = vmax.f32 %v1752_v34, 0.0  ;;  %v1617_v46 = vmul.f32 0.03125, %v1580_v39  ;;  %v1578_v47 = vpop.xlane.xlu0 %1577 }
 0x424   : > { %v2542_v49 = vpop.eup %2541  ;;  %1785 = vst [vmem:[%s3329_s9 + $0x20] sm:$0xff] %v1769_v36  ;;  %v1709_v51 = vmul.f32 %v2540_v40, %v1661_v38  ;;  %v1616_v13 = vmul.f32 0.03125, %v1578_v47  ;;  %v1665_v36 = vsub.f32 %v3541_v25, %v3633_v22 }
 0x425   : > { %1784 = vst [vmem:[%s3329_s9 + $0x18] sm:$0xff] %v1768_v41  ;;  %v1708_v23 = vmul.f32 %v2542_v49, %v1660_v44  ;;  %v1649_v54 = vsub.f32 %v1617_v46, %v1633_v45  ;;  %v1664_v41 = vsub.f32 %v3544_v48, %v3636_v32 }
 0x426   : > { %v1732_v55 = vmul.f32 %v3595_v21, %v1709_v51  ;;  %v1648_v29 = vsub.f32 %v1616_v13, %v1632_v52  ;;  %v1536_v57 = vpop.xlane.xlu1 %1535 }
 0x427   : > { %v1731_v14 = vmul.f32 %v3595_v21, %v1708_v23  ;;  %v1681_v43 = vadd.f32 1e-05, %v1649_v54  ;;  %v3652_v59 = vmul.f32 0.03125, %v1536_v57  ;;  %v1534_v63 = vpop.xlane.xlu0 %1533 }
 0x428   : > { %v1755_v6 = vadd.f32 %v3604_v33, %v1732_v55  ;;  %v1680_v8 = vadd.f32 1e-05, %v1648_v29  ;;  %v3655_v2 = vmul.f32 0.03125, %v1534_v63 }
 0x429   : > { %v1754_v10 = vadd.f32 %v3604_v33, %v1731_v14  ;;  %2547 = vrsqrt.f32 %v1681_v43  ;;  %v1635_v11 = vmul.f32 %v3652_v59, %v3652_v59  ;;  %v1667_v63 = vsub.f32 %v3553_v28, %v3652_v59 }
 0x42a   : > { %v1771_v62 = vmax.f32 %v1755_v6, 0.0  ;;  %2549 = vrsqrt.f32 %v1680_v8  ;;  %v1584_v3 = vpop.xlane.xlu1 %1583  ;;  %v1634_v18 = vmul.f32 %v3655_v2, %v3655_v2 }
 0x42b   : > { %v2544_v12 = vpop.eup %2543  ;;  %v1770_v15 = vmax.f32 %v1754_v10, 0.0  ;;  %v1619_v50 = vmul.f32 0.03125, %v1584_v3  ;;  %v1582_v5 = vpop.xlane.xlu0 %1581  ;;  %v1666_v10 = vsub.f32 %v3556_v31, %v3655_v2 }
 0x42c   : > { %v2546_v0 = vpop.eup %2545  ;;  %1787 = vst [vmem:[%s3329_s9 + $0x30] sm:$0xff] %v1771_v62  ;;  %v1711_v61 = vmul.f32 %v2544_v12, %v1663_v7  ;;  %v1618_v19 = vmul.f32 0.03125, %v1582_v5 }
 0x42d   : > { %1786 = vst [vmem:[%s3329_s9 + $0x28] sm:$0xff] %v1770_v15  ;;  %v1710_v26 = vmul.f32 %v2546_v0, %v1662_v16  ;;  %v1651_v56 = vsub.f32 %v1619_v50, %v1635_v11 }
 0x42e   : > { %v1734_v20 = vmul.f32 %v3595_v21, %v1711_v61  ;;  %v1650_v58 = vsub.f32 %v1618_v19, %v1634_v18  ;;  %v1540_v1 = vpop.xlane.xlu1 %1539 }
 0x42f   : > { %v1733_v53 = vmul.f32 %v3595_v21, %v1710_v26  ;;  %v1683_v60 = vadd.f32 1e-05, %v1651_v56  ;;  %v3670_v17 = vmul.f32 0.03125, %v1540_v1  ;;  %v1538_v30 = vpop.xlane.xlu0 %1537 }
 0x430   : > { %v1757_v24 = vadd.f32 %v3604_v33, %v1734_v20  ;;  %v1682_v27 = vadd.f32 1e-05, %v1650_v58  ;;  %v1604_v9 = vmul.f32 0.03125, %v1538_v30 }
 0x431   : > { %v1756_v42 = vadd.f32 %v3604_v33, %v1733_v53  ;;  %2551 = vrsqrt.f32 %v1683_v60  ;;  %v1637_v44 = vmul.f32 %v3670_v17, %v3670_v17  ;;  %v1669_v0 = vsub.f32 %v3565_v4, %v3670_v17 }
 0x432   : > { %v1773_v34 = vmax.f32 %v1757_v24, 0.0  ;;  %2553 = vrsqrt.f32 %v1682_v27  ;;  %v1588_v38 = vpop.xlane.xlu1 %1587  ;;  %v1636_v51 = vmul.f32 %v1604_v9, %v1604_v9  ;;  %v1668_v19 = vsub.f32 %v3568_v35, %v1604_v9 }
 0x433   : > { %v2548_v39 = vpop.eup %2547  ;;  %v1772_v40 = vmax.f32 %v1756_v42, 0.0  ;;  %v1621_v45 = vmul.f32 0.03125, %v1588_v38  ;;  %v1586_v46 = vpop.xlane.xlu0 %1585 }
 0x434   : > { %v2550_v47 = vpop.eup %2549  ;;  %1789 = vst [vmem:[%s3329_s9 + $0x40] sm:$0xff] %v1773_v34  ;;  %v1713_v49 = vmul.f32 %v2548_v39, %v1665_v36  ;;  %v1620_v52 = vmul.f32 0.03125, %v1586_v46 }
 0x435   : > { %1788 = vst [vmem:[%s3329_s9 + $0x38] sm:$0xff] %v1772_v40  ;;  %v1712_v13 = vmul.f32 %v2550_v47, %v1664_v41  ;;  %v1653_v25 = vsub.f32 %v1621_v45, %v1637_v44 }
 0x436   : > { %v1736_v22 = vmul.f32 %v3595_v21, %v1713_v49  ;;  %v1652_v23 = vsub.f32 %v1620_v52, %v1636_v51 }
 0x437   : > { %v1735_v54 = vmul.f32 %v3595_v21, %v1712_v13  ;;  %v1685_v48 = vadd.f32 1e-05, %v1653_v25  ;;  %v1542_v32 = vpop.xlane.xlu0 %1541 }
 0x438   : > { %v1759_v55 = vadd.f32 %v3604_v33, %v1736_v22  ;;  %v1684_v29 = vadd.f32 1e-05, %v1652_v23  ;;  %v1606_v57 = vmul.f32 0.03125, %v1542_v32 }
 0x439   : > { %v1758_v14 = vadd.f32 %v3604_v33, %v1735_v54  ;;  %2555 = vrsqrt.f32 %v1685_v48 }
 0x43a   : > { %v1775_v43 = vmax.f32 %v1759_v55, 0.0  ;;  %2557 = vrsqrt.f32 %v1684_v29  ;;  %v1638_v12 = vmul.f32 %v1606_v57, %v1606_v57  ;;  %v1670_v30 = vsub.f32 %v3577_v37, %v1606_v57 }
 0x43b   : > { %v2552_v6 = vpop.eup %2551  ;;  %v1774_v8 = vmax.f32 %v1758_v14, 0.0  ;;  %v1590_v62 = vpop.xlane.xlu0 %1589 }
 0x43c   : > { %v2554_v7 = vpop.eup %2553  ;;  %1791 = vst [vmem:[%s3329_s9 + $0x50] sm:$0xff] %v1775_v43  ;;  %v1715_v3 = vmul.f32 %v2552_v6, %v1667_v63  ;;  %v1622_v15 = vmul.f32 0.03125, %v1590_v62 }
 0x43d   : > { %1790 = vst [vmem:[%s3329_s9 + $0x48] sm:$0xff] %v1774_v8  ;;  %v1714_v16 = vmul.f32 %v2554_v7, %v1666_v10 }
 0x43e   : > { %v1738_v11 = vmul.f32 %v3595_v21, %v1715_v3  ;;  %v1654_v50 = vsub.f32 %v1622_v15, %v1638_v12 }
 0x43f   : > { %v1737_v28 = vmul.f32 %v3595_v21, %v1714_v16 }
 0x440   : > { %v1761_v59 = vadd.f32 %v3604_v33, %v1738_v11  ;;  %v1686_v5 = vadd.f32 1e-05, %v1654_v50 }
 0x441   : > { %v1760_v31 = vadd.f32 %v3604_v33, %v1737_v28 }
 0x442   : > { %v1777_v2 = vmax.f32 %v1761_v59, 0.0  ;;  %2559 = vrsqrt.f32 %v1686_v5 }
 0x443   : > { %v2556_v61 = vpop.eup %2555  ;;  %v1776_v18 = vmax.f32 %v1760_v31, 0.0 }
 0x444   : > { %v2558_v26 = vpop.eup %2557  ;;  %1793 = vst [vmem:[%s3329_s9 + $0x60] sm:$0xff] %v1777_v2  ;;  %v1717_v56 = vmul.f32 %v2556_v61, %v1669_v0 }
 0x445   : > { %1792 = vst [vmem:[%s3329_s9 + $0x58] sm:$0xff] %v1776_v18  ;;  %v1716_v20 = vmul.f32 %v2558_v26, %v1668_v19 }
 0x446   : > { %v1740_v58 = vmul.f32 %v3595_v21, %v1717_v56 }
 0x447   : > { %v1739_v1 = vmul.f32 %v3595_v21, %v1716_v20 }
 0x448   : > { %v1763_v53 = vadd.f32 %v3604_v33, %v1740_v58 }
 0x449   : > { %v1762_v4 = vadd.f32 %v3604_v33, %v1739_v1 }
 0x44a   : > { %v1779_v60 = vmax.f32 %v1763_v53, 0.0 }
 0x44b   : > { %v1778_v17 = vmax.f32 %v1762_v4, 0.0 }
 0x44c   : > { %v2560_v24 = vpop.eup %2559  ;;  %1795 = vst [vmem:[%s3329_s9 + $0x70] sm:$0xff] %v1779_v60 }
 0x44d   : > { %1794 = vst [vmem:[%s3329_s9 + $0x68] sm:$0xff] %v1778_v17  ;;  %v1718_v35 = vmul.f32 %v2560_v24, %v1670_v30 }
 0x44f   : > { %v1741_v27 = vmul.f32 %v3595_v21, %v1718_v35 }
 0x451   : > { %v1764_v9 = vadd.f32 %v3604_v33, %v1741_v27 }
 0x453   : > { %v1780_v42 = vmax.f32 %v1764_v9, 0.0 }
 0x455   : > { %1796 = vst [vmem:[%s3329_s9 + $0x78] sm:$0xff] %v1780_v42 }
 0x456 PF: > { %s3883_s20 = sld [smem:[#allocation21_spill]]  ;;  %s3884_s25 = sld [smem:[#allocation32_spill]] }
 0x457   : > { %s1811_s6 = sshll.u32 %s3329_s9, 4  ;;  %s3722_s7 = scalar_lea.sflag [#allocation5], %s395_s30  ;;  %s3718_s6 = int_to_ptr.vmem [resolvable:$true] %s1811_s6 }
 0x458   : > { %s2707_s21 = scalar_lea.vmem %s3718_s6, 2048  ;;  %p3885_p8 = scmp.ne.s32.totalorder %s3865_s0, 0 }
 0x459   : > { %p2708_p10 = scmp.ne.s32.totalorder %s3718_s6, %s2707_s21  ;;  %s2880_s26 = smov [#allocation12]  }
 0x45a   : > { %s2711_s1 = sshll.u32 %s2880_s26, 4  ;;  %s2712_s1 = int_to_ptr.vmem [resolvable:$false] %s2711_s1 }
 0x45b   : > { %p2709_p11 = pnand %p2708_p10, %p3885_p8  ;;  %s2713_s11 = scalar_lea.vmem %s2712_s1, 4096 }
 0x45c   : > { %s2022_s24 = sshll.u32 %s3883_s20, 11  ;;  %p2714_p5 = scmp.lt.s32.totalorder %s3718_s6, %s2712_s1 }
 0x45d   : > { %s3715_s19 = scalar_lea.hbm %s3884_s25, %s2022_s24  ;;  %p2710_p3 = pneg %p2709_p11 }
 0x45e   : > { %p2715_p1 = scmp.lt.s32.totalorder %s2713_s11, %s2707_s21 }
 0x460   : > { %p2716_p4 = por %p2715_p1, %p2714_p5 }
 0x462   : > { %p2717_p2 = pnand %p2716_p4, %p2710_p3 }
 0x464   : > { %2720 = shalt.err (!%p2717_p2)
}
 0x465   : > { %s2721_s30 = scalar_lea.hbm %s3715_s19, 2048  ;;  %s2725_s15 = scalar_lea.hbm %s3884_s25, 6144 }
 0x466   : > { %p2722_p6 = scmp.ne.s32.totalorder %s3715_s19, %s2721_s30  ;;  %p2726_p0 = scmp.lt.u32.totalorder %s3715_s19, %s3884_s25 }
 0x467   : > { %p2727_p12 = scmp.lt.u32.totalorder %s2725_s15, %s2721_s30  ;;  %p2729_p10 = scmp.lt.u32.totalorder %s2721_s30, %s3715_s19 }
 0x468   : > { %p2723_p7 = pnand %p2722_p6, %p3885_p8 }
 0x469   : > { %p2728_p9 = por %p2727_p12, %p2726_p0 }
 0x46a   : > { %p2724_p13 = pneg %p2723_p7 }
 0x46b   : > { %p2730_p11 = por %p2729_p10, %p2728_p9 }
 0x46d   : > { %p2731_p3 = pnand %p2730_p11, %p2724_p13 }
 0x46f   : > { %2734 = shalt.err (!%p2731_p3)
}
 0x470   : > { %s2881_s24 = smov 128   ;;  %s2882_s5 = smov 8  }
 0x471   : > { %2310 = dma.vmem_to_hbm [thread:$0]  (%p3885_p8), %s3718_s6, 2048, %s3715_s19, %s3722_s7, %s2881_s24, %s2881_s24, %s2882_s5  }
 0x472 PF: > { %p2338_p5 = scmp.ge.s32.totalorder %s2865_s18, 2  ;;  %s1826_s10 = sand.u32 1, %s2813_s27  }
 0x473   : > { %p3886_p1 = scmp.ne.s32.totalorder %s3868_s23, 0  ;;  %s1827_s21 = scalar_lea.sflag [#allocation5], %s1826_s10 }
 0x475   : > { %p2330_p4 = pnand %p2338_p5, %p3886_p1 }
 0x477   : > { %2808 = dma.done.wait (!%p2330_p4), %s1827_s21, 2048  }
 0x478   : > { %2810 = vsyncadd (!%p2330_p4), %s1827_s21, 4294965248  ;;  %s28_s18 = sadd.s32 1, %s2865_s18   ;;  %s3888_s30 = sld [smem:[#allocation18_spill]] }
 0x479   : > { %p3751_p2 = scmp.ge.s32.totalorder %s28_s18, 11   ;;  %s3889_s9 = sld [smem:[#allocation19_spill]] }
 0x47a   : > { %s3890_s10 = sld [smem:[#allocation24_spill]]  ;;  %s3891_s0 = sld [smem:[#allocation22_spill]] }
 0x47b   : > { %s3892_s23 = sld [smem:[#allocation23_spill]]  ;;  %s3893_s27 = smov %s2817_s28 }
 0x47c   : > { %s3894_s28 = smov %s2821_s29  ;;  %s3895_s29 = smov %s3227_s14 }
 0x47d   : > { %s3896_s11 = smov %s2841_s12  ;;  %s3897_s12 = smov %s2845_s13 }
 0x47e   : > { %s3898_s13 = smov %s3162_s22  ;;  %s3899_s14 = smov %s2857_s16 }
 0x47f   : > { %s3900_s15 = smov %s2861_s17  ;;  %27 = sbr.rel (!%p3751_p2) target bundleno = 21 (0x15), region = 137 }
 0x480   : > { %s3901_s16 = smov %s3891_s0 }
 0x481   : > { %s3902_s17 = smov %s3892_s23 }
 0x486   :  { %1832 = vsyncpa [#allocation4], 1 }
 0x487   :  { %1834 = vsyncpa [#allocation4 + $0x1], 1 }
 0x488   :  { %1835 = vsyncpa [#allocation7], 1 }
 0x489   :  { %1837 = vsyncpa [#allocation7 + $0x1], 1 }
 0x48a   :  { %1838 = vsyncpa [#allocation10], 1 }
 0x48b   :  { %1839 = vsyncpa [#allocation5], 1 }
 0x48c   :  { %1841 = vsyncpa [#allocation5 + $0x1], 1 }

</bundles_post_ra>
